<compile_context>
chip_gen: v6e
topology: v6e:2x2x1
jax: 0.10.0
libtpu: 0.0.40
codegen_flags: <defaults>
</compile_context>

<pallas_src>
import functools
import math

import jax
import jax.numpy as jnp
from jax import lax
from jax.experimental import pallas as pl
from jax.experimental.pallas import tpu as pltpu

_EPS = 1e-5
_LANE = 128
_VMEM_LIMIT = 64 * 1024 * 1024   # explicit budget; fits v5e/v6e/v7x


def _round_up(x, m):
    return (x + m - 1) // m * m


def _row_tile(h, target=8):
    """Largest divisor of h that is <= target (row-tile height)."""
    for t in range(min(h, target), 0, -1):
        if h % t == 0:
            return t
    return h


# ------------------------------ kernel helpers -------------------------------

def _fill_zero_padded(xpad_ref, x_ref):
    """Write one image into the centre of a zero-initialised halo scratch."""
    h, w = x_ref.shape[1], x_ref.shape[2]
    xpad_ref[...] = jnp.zeros_like(xpad_ref)
    xpad_ref[1:h + 1, 1:w + 1, :] = x_ref[0].astype(xpad_ref.dtype)


def _conv3x3_rows(xpad_ref, w_ref, row0, th, width, cdt):
    """im2col 3x3 conv of rows [row0, row0+th) -> (th*width, Cout_pad) f32."""
    cpi = xpad_ref.shape[-1]
    tile = xpad_ref[pl.ds(row0, th + 2)]                    # (th+2, width+2, cpi)
    cols = []
    for ky in range(3):
        for kx in range(3):
            cols.append(tile[ky:ky + th, kx:kx + width, :].reshape(th * width, cpi))
    patch = jnp.concatenate(cols, axis=1).astype(cdt)       # (th*width, 9*cpi)
    return jnp.dot(patch, w_ref[...].astype(cdt),
                   preferred_element_type=jnp.float32)


# --------------------------------- kernels ------------------------------------

def _conv3x3_kernel(x_ref, w_ref, b_ref, out_ref, xpad_ref, *, th, relu, cdt):
    """3x3 'same' conv (stride 1) + folded-BN bias + optional ReLU."""
    t = pl.program_id(1)

    @pl.when(t == 0)
    def _():
        _fill_zero_padded(xpad_ref, x_ref)

    width = out_ref.shape[2]
    row0 = pl.multiple_of(t * th, th)
    y = _conv3x3_rows(xpad_ref, w_ref, row0, th, width, cdt) + b_ref[...]
    if relu:
        y = jnp.maximum(y, 0.0)
    out_ref[0] = y.reshape(th, width, -1).astype(out_ref.dtype)


def _conv3x3_add_kernel(x_ref, r_ref, w_ref, b_ref, out_ref, xpad_ref, *, th, cdt):
    """conv2 + bias + identity residual + ReLU (stride == 1 epilogue fusion)."""
    t = pl.program_id(1)

    @pl.when(t == 0)
    def _():
        _fill_zero_padded(xpad_ref, x_ref)

    width = out_ref.shape[2]
    row0 = pl.multiple_of(t * th, th)
    y = _conv3x3_rows(xpad_ref, w_ref, row0, th, width, cdt) + b_ref[...]
    y = y + r_ref[0].reshape(th * width, -1)
    y = jnp.maximum(y, 0.0)
    out_ref[0] = y.reshape(th, width, -1).astype(out_ref.dtype)


def _conv3x3_down_kernel(x_ref, r_ref, w_ref, b_ref, wd_ref, bd_ref, out_ref,
                         xpad_ref, *, th, cdt):
    """conv2 + bias + fused 1x1 'downsample' conv of the raw input.

    No ReLU here: the x2 bilinear upsample is linear, so
    up(bn2(conv2(h))) + up(bn_d(conv1x1(x))) == up(this kernel's output);
    the ReLU is applied inside the upsample kernel.
    """
    t = pl.program_id(1)

    @pl.when(t == 0)
    def _():
        _fill_zero_padded(xpad_ref, x_ref)

    width = out_ref.shape[2]
    row0 = pl.multiple_of(t * th, th)
    y = _conv3x3_rows(xpad_ref, w_ref, row0, th, width, cdt) + b_ref[...]
    r = r_ref[0].reshape(th * width, -1).astype(cdt)
    y = y + jnp.dot(r, wd_ref[...].astype(cdt),
                    preferred_element_type=jnp.float32) + bd_ref[...]
    out_ref[0] = y.reshape(th, width, -1).astype(out_ref.dtype)


def _upsample2x_relu_kernel(z_ref, out_ref, zpad_ref, *, th):
    """Bilinear x2 (align_corners=False) + ReLU for one row tile.

    Column phases are packed along the lane dim (..., W, 2C) and row phases as
    an extra size-2 axis, so the (N, H, 2, W, 2C) output is bit-identical in
    HBM to the interleaved (N, 2H, 2W, C) tensor — no host-side shuffle.
    """
    t = pl.program_id(1)
    h, w = z_ref.shape[1], z_ref.shape[2]

    @pl.when(t == 0)
    def _():
        # Edge-clamped (replicate) halo, built in VMEM.
        zpad_ref[1:h + 1, 1:w + 1, :] = z_ref[0]
        zpad_ref[0:1, :, :] = zpad_ref[1:2, :, :]
        zpad_ref[h + 1:h + 2, :, :] = zpad_ref[h:h + 1, :, :]
        zpad_ref[:, 0:1, :] = zpad_ref[:, 1:2, :]
        zpad_ref[:, w + 1:w + 2, :] = zpad_ref[:, w:w + 1, :]

    row0 = pl.multiple_of(t * th, th)
    tile = zpad_ref[pl.ds(row0, th + 2)]                     # (th+2, w+2, C)
    r_even = 0.25 * tile[0:th] + 0.75 * tile[1:th + 1]       # output rows 2i
    r_odd = 0.75 * tile[1:th + 1] + 0.25 * tile[2:th + 2]    # output rows 2i+1

    def col_phases(r):
        c_even = 0.25 * r[:, 0:w, :] + 0.75 * r[:, 1:w + 1, :]
        c_odd = 0.75 * r[:, 1:w + 1, :] + 0.25 * r[:, 2:w + 2, :]
        return jnp.concatenate([c_even, c_odd], axis=-1)     # (th, w, 2C)

    y = jnp.stack([col_phases(r_even), col_phases(r_odd)], axis=1)  # (th,2,w,2C)
    out_ref[0] = jnp.maximum(y, 0.0).astype(out_ref.dtype)


# --------------------------- pallas_call wrappers -----------------------------

def _compiler_params():
    return pltpu.CompilerParams(
        dimension_semantics=("parallel", "arbitrary"),
        vmem_limit_bytes=_VMEM_LIMIT)


def conv3x3_fused(x, w, b, *, relu, residual=None, down=None,
                  compute_dtype=jnp.bfloat16):
    """3x3 'same' conv with folded BN and an optional fused residual epilogue.

    x        : (N, H, W, Cpi) f32, channel-padded NHWC.
    w        : (9*Cpi, Cpo)   folded+padded im2col weights.
    b        : (1, Cpo)       folded+padded bias.
    residual : optional (N, H, W, Cr) tensor, added identically (down=None,
               with ReLU) or fed through the 1x1 conv down=(wd, bd) (no ReLU).
    """
    N, H, W, Cpi = x.shape
    Cpo = w.shape[1]
    th = _row_tile(H)
    grid = (N, H // th)

    inputs = [x]
    in_specs = [pl.BlockSpec((1, H, W, Cpi), lambda n, t: (n, 0, 0, 0))]
    if residual is not None:
        cr = residual.shape[-1]
        inputs.append(residual)
        in_specs.append(pl.BlockSpec((1, th, W, cr), lambda n, t: (n, t, 0, 0)))
    inputs += [w, b]
    in_specs += [pl.BlockSpec((9 * Cpi, Cpo), lambda n, t: (0, 0)),
                 pl.BlockSpec((1, Cpo), lambda n, t: (0, 0))]

    if residual is None:
        kernel = functools.partial(_conv3x3_kernel, th=th, relu=relu,
                                   cdt=compute_dtype)
    elif down is None:
        kernel = functools.partial(_conv3x3_add_kernel, th=th, cdt=compute_dtype)
    else:
        wd, bd = down
        inputs += [wd, bd]
        in_specs += [pl.BlockSpec(wd.shape, lambda n, t: (0, 0)),
                     pl.BlockSpec((1, Cpo), lambda n, t: (0, 0))]
        kernel = functools.partial(_conv3x3_down_kernel, th=th, cdt=compute_dtype)

    return pl.pallas_call(
        kernel,
        out_shape=jax.ShapeDtypeStruct((N, H, W, Cpo), jnp.float32),
        grid=grid,
        in_specs=in_specs,
        out_specs=pl.BlockSpec((1, th, W, Cpo), lambda n, t: (n, t, 0, 0)),
        scratch_shapes=[pltpu.VMEM((H + 2, W + 2, Cpi), compute_dtype)],
        compiler_params=_compiler_params(),
    )(*inputs)


def upsample2x_relu(z):
    """Bilinear x2 upsample + ReLU.  z: (N, H, W, C) -> (N, 2H, 2W, C)."""
    N, H, W, C = z.shape
    th = _row_tile(H)
    out = pl.pallas_call(
        functools.partial(_upsample2x_relu_kernel, th=th),
        out_shape=jax.ShapeDtypeStruct((N, H, 2, W, 2 * C), jnp.float32),
        grid=(N, H // th),
        in_specs=[pl.BlockSpec((1, H, W, C), lambda n, t: (n, 0, 0, 0))],
        out_specs=pl.BlockSpec((1, th, 2, W, 2 * C), lambda n, t: (n, t, 0, 0, 0)),
        scratch_shapes=[pltpu.VMEM((H + 2, W + 2, C), jnp.float32)],
        compiler_params=_compiler_params(),
    )(z)
    # (N, H, 2, W, 2C) and (N, 2H, 2W, C) share the same row-major layout:
    return out.reshape(N, 2 * H, 2 * W, C)


# --------------------- host-side BN folding / channel padding -----------------

def _fold_bn(w, b, bn):
    """Fold inference-mode BatchNorm into the conv weight (..., Cout) + bias."""
    gamma, beta, mean, var = bn
    scale = gamma / jnp.sqrt(var + _EPS)
    return w * scale, b * scale + beta - mean * scale


def _pad_axis(a, axis, new):
    pad = [(0, 0)] * a.ndim
    pad[axis] = (0, new - a.shape[axis])
    return jnp.pad(a, pad)


def _prep_conv3x3(w_hwio, b, bn, cpi, cpo):
    wf, bf = _fold_bn(w_hwio, b, bn)
    wf = _pad_axis(_pad_axis(wf, 2, cpi), 3, cpo)          # (3, 3, cpi, cpo)
    return wf.reshape(9 * cpi, cpo), _pad_axis(bf, 0, cpo).reshape(1, cpo)


def _prep_conv1x1(w_io, b, bn, cpi, cpo):
    wf, bf = _fold_bn(w_io, b, bn)
    wf = _pad_axis(_pad_axis(wf, 0, cpi), 1, cpo)          # (cpi, cpo)
    return wf, _pad_axis(bf, 0, cpo).reshape(1, cpo)


# --------------------------------- forward ------------------------------------

def res_decoder_block(x_nchw, params, stride, *, compute_dtype=jnp.bfloat16):
    """Pallas implementation of resDecoderBlock.forward (NCHW in / NCHW out)."""
    N, Cin, H, W = x_nchw.shape
    Cmid = params["conv1_w"].shape[-1]                     # == Cin
    Cout = params["conv2_w"].shape[-1]
    cpi = _round_up(Cin, _LANE)
    cpm = _round_up(Cmid, _LANE)
    cpo = _round_up(Cout, _LANE)

    # NCHW -> NHWC + channel pad to a lane multiple (single fused XLA copy).
    x = jnp.transpose(x_nchw, (0, 2, 3, 1)).astype(jnp.float32)
    x = _pad_axis(x, 3, cpi)

    w1, b1 = _prep_conv3x3(params["conv1_w"], params["conv1_b"], params["bn1"],
                           cpi, cpm)
    w2, b2 = _prep_conv3x3(params["conv2_w"], params["conv2_b"], params["bn2"],
                           cpm, cpo)

    h = conv3x3_fused(x, w1, b1, relu=True, compute_dtype=compute_dtype)

    if stride == 1:
        assert Cin == Cout, "identity residual requires inChannel == outChannel"
        y = conv3x3_fused(h, w2, b2, relu=True, residual=x,
                          compute_dtype=compute_dtype)
    else:
        wd, bd = _prep_conv1x1(params["down_w"], params["down_b"], params["bn_d"],
                               cpi, cpo)
        z = conv3x3_fused(h, w2, b2, relu=False, residual=x, down=(wd, bd),
                          compute_dtype=compute_dtype)
        y = upsample2x_relu(z)

    return jnp.transpose(y[..., :Cout], (0, 3, 1, 2))       # -> NCHW


# ------------------------------ parameter init --------------------------------

def init_params(key, cin, cout, stride):
    ks = iter(jax.random.split(key, 20))

    def conv_w(shape):
        fan_in = shape[0] * shape[1] * shape[2] if len(shape) == 4 else shape[0]
        bound = 1.0 / math.sqrt(fan_in)
        return jax.random.uniform(next(ks), shape, jnp.float32, -bound, bound)

    def bn_params(c):
        return (jax.random.uniform(next(ks), (c,), jnp.float32, 0.5, 1.5),   # gamma
                jax.random.uniform(next(ks), (c,), jnp.float32, -0.3, 0.3),  # beta
                0.1 * jax.random.normal(next(ks), (c,), jnp.float32),        # run. mean
                jax.random.uniform(next(ks), (c,), jnp.float32, 0.5, 1.5))   # run. var

    p = {
        "conv1_w": conv_w((3, 3, cin, cin)),   # HWIO
        "conv1_b": conv_w((cin,)),
        "bn1": bn_params(cin),
        "conv2_w": conv_w((3, 3, cin, cout)),
        "conv2_b": conv_w((cout,)),
        "bn2": bn_params(cout),
    }
    if stride != 1:
        p["down_w"] = conv_w((cin, cout))      # 1x1 conv as (Cin, Cout) matrix
        p["down_b"] = conv_w((cout,))
        p["bn_d"] = bn_params(cout)
    return p


# ------------------------------ pure-JAX reference -----------------------------

def _ref_upsample2x(x):
    """PyTorch nn.Upsample(scale_factor=2, mode='bilinear', align_corners=False)."""
    N, H, W, C = x.shape

    def idx(out_size, in_size):
        d = jnp.arange(out_size, dtype=jnp.float32)
        src = jnp.maximum((d + 0.5) / 2.0 - 0.5, 0.0)
        i0 = jnp.floor(src).astype(jnp.int32)
        i1 = jnp.minimum(i0 + 1, in_size - 1)
        w1 = src - i0.astype(jnp.float32)
        return i0, i1, 1.0 - w1, w1

    i0, i1, wh0, wh1 = idx(2 * H, H)
    j0, j1, ww0, ww1 = idx(2 * W, W)
    xr = x[:, i0] * wh0[None, :, None, None] + x[:, i1] * wh1[None, :, None, None]
    return xr[:, :, j0] * ww0[None, None, :, None] + xr[:, :, j1] * ww1[None, None, :, None]


def ref_forward(x_nchw, params, stride):
    x = jnp.transpose(x_nchw, (0, 2, 3, 1)).astype(jnp.float32)

    def conv3(z, w, b):
        y = lax.conv_general_dilated(z, w, (1, 1), "SAME",
                                     dimension_numbers=("NHWC", "HWIO", "NHWC"))
        return y + b

    def bn(z, p):
        gamma, beta, mean, var = p
        return (z - mean) / jnp.sqrt(var + _EPS) * gamma + beta

    out = jax.nn.relu(bn(conv3(x, params["conv1_w"], params["conv1_b"]), params["bn1"]))
    out = bn(conv3(out, params["conv2_w"], params["conv2_b"]), params["bn2"])
    if stride == 1:
        residual = x
    else:
        out = _ref_upsample2x(out)
        r = jnp.einsum("nhwc,co->nhwo", x, params["down_w"]) + params["down_b"]
        residual = _ref_upsample2x(bn(r, params["bn_d"]))
    return jnp.transpose(jax.nn.relu(out + residual), (0, 3, 1, 2))


# ----------------------------------- main --------------------------------------

if __name__ == "__main__":
    key = jax.random.PRNGKey(0)
    kx, kp2, kp1 = jax.random.split(key, 3)
    N, Cin, Cout, H, W = 2, 4, 8, 16, 16
    x = jax.random.normal(kx, (N, Cin, H, W), jnp.float32)   # NCHW, like PyTorch

    # stride != 1: bilinear x2 upsample + (1x1 conv + BN + upsample) residual.
    p2 = init_params(kp2, Cin, Cout, stride=2)
    ref2 = ref_forward(x, p2, stride=2)

    out2_f32 = jax.block_until_ready(
        res_decoder_block(x, p2, stride=2, compute_dtype=jnp.float32))
    assert out2_f32.shape == (N, Cout, 2 * H, 2 * W)
    err = float(jnp.max(jnp.abs(out2_f32 - ref2)))
    assert err < 5e-4, f"stride=2 f32 max error {err}"

    out2_bf16 = jax.block_until_ready(res_decoder_block(x, p2, stride=2))
    err = float(jnp.max(jnp.abs(out2_bf16 - ref2)))
    assert err < 5e-2, f"stride=2 bf16 max error {err}"   # bf16 MXU operands

    # stride == 1: identity residual (requires Cin == Cout).
    p1 = init_params(kp1, Cin, Cin, stride=1)
    ref1 = ref_forward(x, p1, stride=1)

    out1_f32 = jax.block_until_ready(
        res_decoder_block(x, p1, stride=1, compute_dtype=jnp.float32))
    assert out1_f32.shape == (N, Cin, H, W)
    err = float(jnp.max(jnp.abs(out1_f32 - ref1)))
    assert err < 5e-4, f"stride=1 f32 max error {err}"

    out1_bf16 = jax.block_until_ready(res_decoder_block(x, p1, stride=1))
    err = float(jnp.max(jnp.abs(out1_bf16 - ref1)))
    assert err < 5e-2, f"stride=1 bf16 max error {err}"   # bf16 MXU operands

    print("KERNEL_OK")
</pallas_src>

<mosaic_0001>
module attributes {stable_mosaic.version = 11 : i64} {
  func.func @_conv3x3_kernel(%arg0: i32, %arg1: i32, %arg2: memref<1x16x16x128xf32, #tpu.memory_space<vmem>>, %arg3: memref<1152x128xf32, #tpu.memory_space<vmem>>, %arg4: memref<1x128xf32, #tpu.memory_space<vmem>>, %arg5: memref<1x8x16x128xf32, #tpu.memory_space<vmem>>, %arg6: memref<18x18x128xf32, #tpu.memory_space<vmem>>) attributes {dimension_semantics = [#tpu.dimension_semantics<parallel>, #tpu.dimension_semantics<arbitrary>], iteration_bounds = array<i64: 2, 2>, scalar_prefetch = 0 : i64, scratch_operands = 1 : i64, tpu.core_type = #tpu.core_type<tc>, window_params = [{transform_indices = @transform_0, window_bounds = array<i64: 1, 16, 16, 128>}, {pipeline_mode = #tpu.pipeline_mode<synchronous>, transform_indices = @transform_1, window_bounds = array<i64: 1152, 128>}, {pipeline_mode = #tpu.pipeline_mode<synchronous>, transform_indices = @transform_2, window_bounds = array<i64: 1, 128>}, {transform_indices = @transform_3, window_bounds = array<i64: 1, 8, 16, 128>}]} {
    %c0_i32 = arith.constant 0 : i32
    %0 = arith.cmpi eq, %arg1, %c0_i32 : i32
    %1 = arith.extui %0 : i1 to i32
    %c0_i32_0 = arith.constant 0 : i32
    %2 = arith.cmpi ne, %1, %c0_i32_0 : i32
    scf.if %2 {
      %cst_11 = arith.constant 0.000000e+00 : f32
      %37 = vector.broadcast %cst_11 : f32 to vector<18x18x128xf32>
      %c0_12 = arith.constant 0 : index
      %c0_13 = arith.constant 0 : index
      %c0_14 = arith.constant 0 : index
      %38 = vector.load %arg6[%c0_12, %c0_13, %c0_14] : memref<18x18x128xf32, #tpu.memory_space<vmem>>, vector<18x18x128xf32>
      tpu.vector_store %arg6[%c0_12, %c0_13, %c0_14], %37 {strides = array<i32>} : memref<18x18x128xf32, #tpu.memory_space<vmem>>, vector<18x18x128xf32>,
      %c0_15 = arith.constant 0 : index
      %c0_16 = arith.constant 0 : index
      %c0_17 = arith.constant 0 : index
      %c0_18 = arith.constant 0 : index
      %39 = vector.load %arg2[%c0_15, %c0_16, %c0_17, %c0_18] : memref<1x16x16x128xf32, #tpu.memory_space<vmem>>, vector<1x16x16x128xf32>
      %40 = vector.shape_cast %39 : vector<1x16x16x128xf32> to vector<16x16x128xf32>
      %c1 = arith.constant 1 : index
      %c1_19 = arith.constant 1 : index
      %c0_20 = arith.constant 0 : index
      %41 = vector.load %arg6[%c1, %c1_19, %c0_20] : memref<18x18x128xf32, #tpu.memory_space<vmem>>, vector<16x16x128xf32>
      tpu.vector_store %arg6[%c1, %c1_19, %c0_20], %40 {strides = array<i32>} : memref<18x18x128xf32, #tpu.memory_space<vmem>>, vector<16x16x128xf32>,
    } else {
    }
    %c8_i32 = arith.constant 8 : i32
    %3 = arith.muli %arg1, %c8_i32 : i32
    %4 = tpu.assume_multiple %3, 8 : i32
    %5 = arith.index_cast %4 : i32 to index
    %c0 = arith.constant 0 : index
    %c0_1 = arith.constant 0 : index
    %6 = vector.load %arg6[%5, %c0, %c0_1] : memref<18x18x128xf32, #tpu.memory_space<vmem>>, vector<10x18x128xf32>
    %7 = vector.extract_strided_slice %6 {offsets = [0, 0, 0], sizes = [8, 16, 128], strides = [1, 1, 1]} : vector<10x18x128xf32> to vector<8x16x128xf32>
    %8 = vector.shape_cast %7 : vector<8x16x128xf32> to vector<128x128xf32>
    %9 = vector.extract_strided_slice %6 {offsets = [0, 1, 0], sizes = [8, 16, 128], strides = [1, 1, 1]} : vector<10x18x128xf32> to vector<8x16x128xf32>
    %10 = vector.shape_cast %9 : vector<8x16x128xf32> to vector<128x128xf32>
    %11 = vector.extract_strided_slice %6 {offsets = [0, 2, 0], sizes = [8, 16, 128], strides = [1, 1, 1]} : vector<10x18x128xf32> to vector<8x16x128xf32>
    %12 = vector.shape_cast %11 : vector<8x16x128xf32> to vector<128x128xf32>
    %13 = vector.extract_strided_slice %6 {offsets = [1, 0, 0], sizes = [8, 16, 128], strides = [1, 1, 1]} : vector<10x18x128xf32> to vector<8x16x128xf32>
    %14 = vector.shape_cast %13 : vector<8x16x128xf32> to vector<128x128xf32>
    %15 = vector.extract_strided_slice %6 {offsets = [1, 1, 0], sizes = [8, 16, 128], strides = [1, 1, 1]} : vector<10x18x128xf32> to vector<8x16x128xf32>
    %16 = vector.shape_cast %15 : vector<8x16x128xf32> to vector<128x128xf32>
    %17 = vector.extract_strided_slice %6 {offsets = [1, 2, 0], sizes = [8, 16, 128], strides = [1, 1, 1]} : vector<10x18x128xf32> to vector<8x16x128xf32>
    %18 = vector.shape_cast %17 : vector<8x16x128xf32> to vector<128x128xf32>
    %19 = vector.extract_strided_slice %6 {offsets = [2, 0, 0], sizes = [8, 16, 128], strides = [1, 1, 1]} : vector<10x18x128xf32> to vector<8x16x128xf32>
    %20 = vector.shape_cast %19 : vector<8x16x128xf32> to vector<128x128xf32>
    %21 = vector.extract_strided_slice %6 {offsets = [2, 1, 0], sizes = [8, 16, 128], strides = [1, 1, 1]} : vector<10x18x128xf32> to vector<8x16x128xf32>
    %22 = vector.shape_cast %21 : vector<8x16x128xf32> to vector<128x128xf32>
    %23 = vector.extract_strided_slice %6 {offsets = [2, 2, 0], sizes = [8, 16, 128], strides = [1, 1, 1]} : vector<10x18x128xf32> to vector<8x16x128xf32>
    %24 = vector.shape_cast %23 : vector<8x16x128xf32> to vector<128x128xf32>
    %25 = tpu.concatenate %8, %10, %12, %14, %16, %18, %20, %22, %24 in 1 : vector<128x128xf32>, vector<128x128xf32>, vector<128x128xf32>, vector<128x128xf32>, vector<128x128xf32>, vector<128x128xf32>, vector<128x128xf32>, vector<128x128xf32>, vector<128x128xf32> -> vector<128x1152xf32>
    %c0_2 = arith.constant 0 : index
    %c0_3 = arith.constant 0 : index
    %26 = vector.load %arg3[%c0_2, %c0_3] : memref<1152x128xf32, #tpu.memory_space<vmem>>, vector<1152x128xf32>
    %cst = arith.constant dense<0.000000e+00> : vector<128x128xf32>
    %27 = tpu.matmul %25, %26, %cst {dimension_numbers = #tpu.dot_dimension_numbers<[1], [0], [0], [1], [0, 0, 1, 1], [], []>} : vector<128x1152xf32>, vector<1152x128xf32>, vector<128x128xf32> -> vector<128x128xf32>
    %c0_4 = arith.constant 0 : index
    %c0_5 = arith.constant 0 : index
    %28 = vector.load %arg4[%c0_4, %c0_5] : memref<1x128xf32, #tpu.memory_space<vmem>>, vector<1x128xf32>
    %29 = vector.broadcast %28 : vector<1x128xf32> to vector<128x128xf32>
    %30 = arith.addf %27, %29 : vector<128x128xf32>
    %cst_6 = arith.constant 0.000000e+00 : f32
    %31 = vector.broadcast %cst_6 : f32 to vector<128x128xf32>
    %32 = arith.maximumf %30, %31 : vector<128x128xf32>
    %33 = vector.shape_cast %32 : vector<128x128xf32> to vector<8x16x128xf32>
    %c0_7 = arith.constant 0 : index
    %c0_8 = arith.constant 0 : index
    %c0_9 = arith.constant 0 : index
    %c0_10 = arith.constant 0 : index
    %34 = vector.load %arg5[%c0_7, %c0_8, %c0_9, %c0_10] : memref<1x8x16x128xf32, #tpu.memory_space<vmem>>, vector<1x8x16x128xf32>
    %35 = vector.shape_cast %34 : vector<1x8x16x128xf32> to vector<8x16x128xf32>
    %36 = vector.shape_cast %33 : vector<8x16x128xf32> to vector<1x8x16x128xf32>
    tpu.vector_store %arg5[%c0_7, %c0_8, %c0_9, %c0_10], %36 {strides = array<i32>} : memref<1x8x16x128xf32, #tpu.memory_space<vmem>>, vector<1x8x16x128xf32>,
    return
  }
  func.func @transform_0(%arg0: i32, %arg1: i32) -> (i32, i32, i32, i32) {
    %c0_i32 = arith.constant 0 : i32
    %c0_i32_0 = arith.constant 0 : i32
    %c0_i32_1 = arith.constant 0 : i32
    %c0_i32_2 = arith.constant 0 : i32
    return %arg0, %c0_i32, %c0_i32_0, %c0_i32_1 : i32, i32, i32, i32
  }
  func.func @transform_1(%arg0: i32, %arg1: i32) -> (i32, i32) {
    %c0_i32 = arith.constant 0 : i32
    %c0_i32_0 = arith.constant 0 : i32
    %c0_i32_1 = arith.constant 0 : i32
    return %c0_i32, %c0_i32_0 : i32, i32
  }
  func.func @transform_2(%arg0: i32, %arg1: i32) -> (i32, i32) {
    %c0_i32 = arith.constant 0 : i32
    %c0_i32_0 = arith.constant 0 : i32
    %c0_i32_1 = arith.constant 0 : i32
    return %c0_i32, %c0_i32_0 : i32, i32
  }
  func.func @transform_3(%arg0: i32, %arg1: i32) -> (i32, i32, i32, i32) {
    %c0_i32 = arith.constant 0 : i32
    %c0_i32_0 = arith.constant 0 : i32
    %c0_i32_1 = arith.constant 0 : i32
    return %arg0, %arg1, %c0_i32, %c0_i32_0 : i32, i32, i32, i32
  }
}

</mosaic_0001>

<bundles_post_ra>
// kernel: tpu_custom_call.1
= control target key start
LH: loop header
LB: loop body
LE: loop exit
PB: predicated region body
PF: predicated region fallthrough
CT: control target
= control target key end

     0   :  { %s3152_s0 = inlined_call_operand.hbm [shape: f32[2,16,16,128], index: 0, kind: input, shape index: {}]   ;;  %s3153_s1 = inlined_call_operand.hbm [shape: f32[1152,128], index: 1, kind: input, shape index: {}]   ;;  %s3154_s2 = inlined_call_operand.vmem [shape: f32[1,128], index: 2, kind: input, shape index: {}]   ;;  %s3155_s3 = inlined_call_operand.hbm [shape: f32[2,16,16,128], index: 3, kind: output, shape index: {}]  }
   0x1   :  { %3165 = sst [smem:[#allocation36_spill]] %s3153_s1 }
   0x2   :  { %3166 = sst [smem:[#allocation37_spill]] %s3155_s3 }
   0x3   :  { %8 = vsyncpa [#allocation4], 0 }
   0x4   :  { %10 = vsyncpa [#allocation4 + $0x1], 0 }
   0x5   :  { %11 = vsyncpa [#allocation7], 0 }
   0x6   :  { %12 = vsyncpa [#allocation5], 0 }
   0x7   :  { %14 = vsyncpa [#allocation5 + $0x1], 0  ;;  %s2362_s12 = smov 0   ;;  %s2364_s13 = smov 0  }
   0x8   :  { %s2366_s14 = smov 0   ;;  %s2368_s15 = smov 0  }
   0x9   :  { %s2370_s16 = smov 0   ;;  %s2372_s17 = smov 0  }
   0xa   :  { %s2374_s18 = smov 0   ;;  %s2376_s19 = smov 0  }
   0xb   :  { %s2378_s20 = smov 0   ;;  %s2380_s21 = smov 0  }
   0xc   :  { %s2382_s22 = smov 0  }
   0xd LB: > { %3167 = sst [smem:[#allocation12_spill]] %s2292_s12  ;;  %s1571_s23 = sadd.s32 4294967295, %s2332_s22   ;;  %s2332_s22 = sphi %s2382_s22, %s20_s22   ;;  %s2328_s21 = sphi %s2380_s21, %s3238_s21   ;;  %s2324_s20 = sphi %s2378_s20, %s3229_s20   ;;  %s2320_s19 = sphi %s2376_s19, %s3237_s19   ;;  %s2316_s18 = sphi %s2374_s18, %s3228_s18   ;;  %s2312_s17 = sphi %s2372_s17, %s3236_s17   ;;  %s2308_s16 = sphi %s2370_s16, %s3235_s16   ;;  %s2304_s15 = sphi %s2368_s15, %s3234_s15   ;;  %s2300_s14 = sphi %s2366_s14, %s3233_s14   ;;  %s2296_s13 = sphi %s2364_s13, %s3232_s13   ;;  %s2292_s12 = sphi %s2362_s12, %s3231_s12  }
   0xe   : > { %3168 = sst [smem:[#allocation13_spill]] %s2324_s20  ;;  %s1572_s24 = sadd.s32 4294967294, %s2332_s22  }
   0xf   : > { %p52_p0 = scmp.ne.s32.totalorder %s2308_s16, %s2304_s15  ;;  %p2418_p1 = scmp.eq.s32.totalorder %s1571_s23, 0 }
  0x10   : > { %s109_s26 = sadd.s32 1, %s2300_s14  ;;  %p119_p2 = scmp.ne.s32.totalorder %s2300_s14, %s2296_s13 }
  0x11   : > { %p2427_p3 = por %p2418_p1, %p52_p0  ;;  %p120_p4 = scmp.eq.s32.totalorder %s1571_s23, 3 }
  0x12   : > { %p125_p5 = scmp.ne.s32.totalorder %s2296_s13, %s2292_s12  ;;  %p126_p6 = scmp.eq.s32.totalorder %s1572_s24, 3 }
  0x13   : > { %p2433_p7 = por %p120_p4, %p119_p2  ;;  %p1573_p8 = scmp.ge.s32.totalorder %s2332_s22, 1 }
  0x14   : > { %p2438_p9 = por %p126_p6, %p125_p5  ;;  %p133_p10 = scmp.lt.s32.totalorder %s2332_s22, 5 }
  0x15   : > { %s3171_s28 = scalar_select %p2433_p7, 1, 0 }
  0x16   : > { %s3172_s29 = scalar_select %p2438_p9, 1, 0 }
  0x17   : > { %p2443_p11 = pnand %p1573_p8, %p133_p10  ;;  %s2334_s4 = smov [#allocation6]  }
  0x18   : > { %3173 = sst [smem:[#allocation14_spill]] %s3172_s29  ;;  %s145_s5 = sshll.u32 %s2334_s4, 4  ;;  %s146_s5 = int_to_ptr.vmem [resolvable:$true] %s145_s5 }
  0x19   : > { %p2044_p12 = pneg %p2443_p11  ;;  %s2165_s6 = scalar_lea.vmem %s146_s5, 18432 }
  0x1a   : > { %p2166_p2 = scmp.ne.s32.totalorder %s146_s5, %s2165_s6  ;;  %p2173_p6 = scmp.lt.s32.totalorder %s146_s5, %s146_s5 }
  0x1b   : > { %p2045_p13 = pnand %p2044_p12, %p2418_p1  ;;  %p2174_p9 = scmp.lt.s32.totalorder %s2165_s6, %s2165_s6 }
  0x1d   : > { %p2156_p0 = pneg %p2045_p13  ;;  %p2175_p7 = por %p2174_p9, %p2173_p6 }
  0x1f   : > { %p2168_p4 = pnand %p2166_p2, %p2156_p0 }
  0x21   : > { %p2169_p5 = pneg %p2168_p4 }
  0x23   : > { %p2176_p8 = pnand %p2175_p7, %p2169_p5 }
  0x25   : > { %2179 = shalt.err (!%p2176_p8)
}
  0x26   : > { %s3157_s7 = smov 128   ;;  %s3158_s8 = smov 8  }
  0x27   : > { %s3175_s1 = sld [smem:[#allocation36_spill]]  ;;  %s29_s11 = sadd.s32 1, %s2324_s20 }
  0x28   : > { %p30_p7 = scmp.ge.s32.totalorder %s29_s11, 2  ;;  %s32_s15 = sadd.s32 1, %s2328_s21 }
  0x29   : > { %s39_s23 = sadd.s32 1, %s2312_s17  ;;  %p46_p9 = scmp.ne.s32.totalorder %s2312_s17, %s2308_s16 }
  0x2a   : > { %s3240_s11 = smov (%p30_p7, %s29_s11), 0  ;;  %s3242_s15 = smov (!%p30_p7, %s32_s15), %s2328_s21 }
  0x2b   : > { %3176 = sst [smem:[#allocation15_spill]] %s3240_s11  ;;  %p47_p10 = scmp.eq.s32.totalorder %s2332_s22, 0 }
  0x2c   : > { %s105_s24 = ssub.s32 %s2324_s20, %s3240_s11  ;;  %p34_p12 = scmp.ge.s32.totalorder %s3242_s15, 2 }
  0x2d   : > { %2047 = dma.hbm_to_vmem [thread:$0]  (!%p2045_p13), %s3175_s1, 18432, %s146_s5, [#allocation7], %s3157_s7, %s3157_s7, %s3158_s8  }
  0x2e   : > { %p2057_p0 = scmp.lt.s32.totalorder %s2332_s22, 4  ;;  %p2469_p13 = por %p47_p10, %p46_p9 }
  0x2f   : > { %s162_s5 = sand.u32 1, %s2312_s17   ;;  %s3244_s15 = smov (%p34_p12, %s3242_s15), 0 }
  0x30   : > { %3178 = sst [smem:[#allocation16_spill]] %s3244_s15  ;;  %s1576_s6 = sshll.u32 %s162_s5, 8 }
  0x31   : > { %s36_s9 = ssub.s32 %s2328_s21, %s3244_s15  ;;  %s1594_s7 = sshll.u32 %s2328_s21, 12 }
  0x32   : > { %p37_p2 = scmp.eq.s32.totalorder %s36_s9, 0  ;;  %s106_s10 = sor.u32 %s105_s24, %s36_s9 }
  0x33   : > { %p107_p4 = scmp.eq.s32.totalorder %s106_s10, 0  ;;  %s172_s29 = scalar_lea.hbm %s3152_s0, %s1594_s7 }
  0x34   : > { %s2480_s8 = scalar_select %p37_p2, %s2312_s17, %s39_s23  }
  0x35   : > { %s2485_s1 = scalar_select %p107_p4, %s2300_s14, %s109_s26  }
  0x36   : > { %s166_s12 = scalar_lea.vmem [#allocation3], %s1576_s6  ;;  %p2494_p5 = pnand %p2057_p0, %p2469_p13 }
  0x37   : > { %s173_s3 = sshll.u32 %s166_s12, 4  ;;  %s163_s24 = scalar_lea.sflag [#allocation4], %s162_s5  ;;  %s174_s3 = int_to_ptr.vmem [resolvable:$true] %s173_s3 }
  0x38   : > { %p2182_p6 = pneg %p2494_p5  ;;  %s2193_s23 = scalar_lea.vmem %s174_s3, 4096 }
  0x39   : > { %p2194_p8 = scmp.ne.s32.totalorder %s174_s3, %s2193_s23  ;;  %s2337_s26 = smov [#allocation3]  }
  0x3a   : > { %s2198_s20 = sshll.u32 %s2337_s26, 4  ;;  %s2199_s20 = int_to_ptr.vmem [resolvable:$false] %s2198_s20 }
  0x3b   : > { %p2196_p7 = pnand %p2194_p8, %p2182_p6  ;;  %s2200_s7 = scalar_lea.vmem %s2199_s20, 8192 }
  0x3c   : > { %p2201_p10 = scmp.lt.s32.totalorder %s174_s3, %s2199_s20  ;;  %p2202_p12 = scmp.lt.s32.totalorder %s2200_s7, %s2193_s23 }
  0x3d   : > { %p2197_p9 = pneg %p2196_p7 }
  0x3e   : > { %p2203_p2 = por %p2202_p12, %p2201_p10 }
  0x40   : > { %p2204_p4 = pnand %p2203_p2, %p2197_p9 }
  0x42   : > { %2207 = shalt.err (!%p2204_p4)
}
  0x43   : > { %s3180_s12 = smov 8   ;;  %s3181_s11 = smov 128  }
  0x44   : > { %2051 = dma.hbm_to_vmem [thread:$0]  (!%p2494_p5), %s172_s29, 4096, %s174_s3, %s163_s24, %s3181_s11, %s3181_s11, %s3180_s12  }
  0x45   : > { %185 = sbr.rel (%p2443_p11) target bundleno = 520 (0x208), region = 32 }
  0x4a   : > { %s187_s4 = sand.u32 1, %s2308_s16  }
  0x4b   : > { %s1580_s5 = sshll.u32 %s187_s4, 8  ;;  %s188_s6 = scalar_lea.sflag [#allocation4], %s187_s4 }
  0x4c   : > { %s2508_s9 = scalar_lea.vmem [#allocation3], %s1580_s5 }
  0x4d   : > { %2279 = dma.done.wait (%p2427_p3), %s188_s6, 4096  }
  0x4e   : > { %2281 = vsyncadd (%p2427_p3), %s188_s6, 4294963200 }
  0x4f   : > { %2283 = dma.done.wait (%p2418_p1), [#allocation7], 18432  }
  0x50   : > { %2285 = vsyncadd (%p2418_p1), [#allocation7], 4294948864  ;;  %s215_s3 = sand.u32 1, %s2296_s13   ;;  %p1583_p11 = scmp.ne.s32.totalorder %s2316_s18, 0 }
  0x51   : > { %s1582_s29 = sshll.u32 %s215_s3, 7 }
  0x52   : > { %s2521_s30 = scalar_lea.vmem [#allocation8], %s1582_s29  ;;  %222 = sbr.rel (%p1583_p11) target bundleno = 131 (0x83), region = 44 }
  0x57   : > { %v277_v0 = vld [vmem:[%s2508_s9] sm:$0xff]  ;;  %v278_v1 = vld [vmem:[%s2508_s9 + $0x8] sm:$0xff]  ;;  %v279_v2 = vld [vmem:[%s2508_s9 + $0x10] sm:$0xff]  ;;  %v2338_v3 = vmov 0.0  }
  0x58   : > { %226 = vst [vmem:[#allocation2 + $0x18] sm:$0xff] %v2338_v3  ;;  %223 = vst [vmem:[#allocation2] sm:$0xff] %v2338_v3  ;;  %v280_v4 = vld [vmem:[%s2508_s9 + $0x18] sm:$0xff]  ;;  %v281_v5 = vld [vmem:[%s2508_s9 + $0x20] sm:$0xff] }
  0x59   : > { %224 = vst [vmem:[#allocation2 + $0x8] sm:$0xff] %v2338_v3  ;;  %225 = vst [vmem:[#allocation2 + $0x10] sm:$0x3] %v2338_v3  ;;  %v282_v6 = vld [vmem:[%s2508_s9 + $0x28] sm:$0xff]  ;;  %v283_v7 = vld [vmem:[%s2508_s9 + $0x30] sm:$0xff] }
  0x5a   : > { %227 = vst [vmem:[#allocation2 + $0x20] sm:$0xff] %v2338_v3  ;;  %228 = vst [vmem:[#allocation2 + $0x28] sm:$0x3] %v2338_v3  ;;  %v284_v8 = vld [vmem:[%s2508_s9 + $0x38] sm:$0xff]  ;;  %v285_v9 = vld [vmem:[%s2508_s9 + $0x40] sm:$0xff] }
  0x5b   : > { %229 = vst [vmem:[#allocation2 + $0x30] sm:$0xff] %v2338_v3  ;;  %230 = vst [vmem:[#allocation2 + $0x38] sm:$0xff] %v2338_v3  ;;  %v286_v10 = vld [vmem:[%s2508_s9 + $0x48] sm:$0xff]  ;;  %v287_v11 = vld [vmem:[%s2508_s9 + $0x50] sm:$0xff] }
  0x5c   : > { %231 = vst [vmem:[#allocation2 + $0x40] sm:$0x3] %v2338_v3  ;;  %232 = vst [vmem:[#allocation2 + $0x48] sm:$0xff] %v2338_v3  ;;  %v288_v12 = vld [vmem:[%s2508_s9 + $0x58] sm:$0xff]  ;;  %v289_v13 = vld [vmem:[%s2508_s9 + $0x60] sm:$0xff] }
  0x5d   : > { %233 = vst [vmem:[#allocation2 + $0x50] sm:$0xff] %v2338_v3  ;;  %234 = vst [vmem:[#allocation2 + $0x58] sm:$0x3] %v2338_v3  ;;  %v290_v14 = vld [vmem:[%s2508_s9 + $0x68] sm:$0xff]  ;;  %v291_v15 = vld [vmem:[%s2508_s9 + $0x70] sm:$0xff] }
  0x5e   : > { %235 = vst [vmem:[#allocation2 + $0x60] sm:$0xff] %v2338_v3  ;;  %236 = vst [vmem:[#allocation2 + $0x68] sm:$0xff] %v2338_v3  ;;  %v292_v16 = vld [vmem:[%s2508_s9 + $0x78] sm:$0xff]  ;;  %v293_v17 = vld [vmem:[%s2508_s9 + $0x80] sm:$0xff] }
  0x5f   : > { %237 = vst [vmem:[#allocation2 + $0x70] sm:$0x3] %v2338_v3  ;;  %238 = vst [vmem:[#allocation2 + $0x78] sm:$0xff] %v2338_v3  ;;  %v294_v18 = vld [vmem:[%s2508_s9 + $0x88] sm:$0xff]  ;;  %v295_v19 = vld [vmem:[%s2508_s9 + $0x90] sm:$0xff] }
  0x60   : > { %239 = vst [vmem:[#allocation2 + $0x80] sm:$0xff] %v2338_v3  ;;  %240 = vst [vmem:[#allocation2 + $0x88] sm:$0x3] %v2338_v3  ;;  %v296_v20 = vld [vmem:[%s2508_s9 + $0x98] sm:$0xff]  ;;  %v297_v21 = vld [vmem:[%s2508_s9 + $0xa0] sm:$0xff] }
  0x61   : > { %241 = vst [vmem:[#allocation2 + $0x90] sm:$0xff] %v2338_v3  ;;  %242 = vst [vmem:[#allocation2 + $0x98] sm:$0xff] %v2338_v3  ;;  %v298_v22 = vld [vmem:[%s2508_s9 + $0xa8] sm:$0xff]  ;;  %v299_v23 = vld [vmem:[%s2508_s9 + $0xb0] sm:$0xff] }
  0x62   : > { %243 = vst [vmem:[#allocation2 + $0xa0] sm:$0x3] %v2338_v3  ;;  %244 = vst [vmem:[#allocation2 + $0xa8] sm:$0xff] %v2338_v3  ;;  %v300_v24 = vld [vmem:[%s2508_s9 + $0xb8] sm:$0xff]  ;;  %v301_v25 = vld [vmem:[%s2508_s9 + $0xc0] sm:$0xff] }
  0x63   : > { %245 = vst [vmem:[#allocation2 + $0xb0] sm:$0xff] %v2338_v3  ;;  %246 = vst [vmem:[#allocation2 + $0xb8] sm:$0x3] %v2338_v3  ;;  %v302_v26 = vld [vmem:[%s2508_s9 + $0xc8] sm:$0xff]  ;;  %v303_v27 = vld [vmem:[%s2508_s9 + $0xd0] sm:$0xff] }
  0x64   : > { %247 = vst [vmem:[#allocation2 + $0xc0] sm:$0xff] %v2338_v3  ;;  %248 = vst [vmem:[#allocation2 + $0xc8] sm:$0xff] %v2338_v3  ;;  %v304_v28 = vld [vmem:[%s2508_s9 + $0xd8] sm:$0xff]  ;;  %v305_v29 = vld [vmem:[%s2508_s9 + $0xe0] sm:$0xff] }
  0x65   : > { %249 = vst [vmem:[#allocation2 + $0xd0] sm:$0x3] %v2338_v3  ;;  %250 = vst [vmem:[#allocation2 + $0xd8] sm:$0xff] %v2338_v3  ;;  %v306_v30 = vld [vmem:[%s2508_s9 + $0xe8] sm:$0xff]  ;;  %v307_v31 = vld [vmem:[%s2508_s9 + $0xf0] sm:$0xff] }
  0x66   : > { %251 = vst [vmem:[#allocation2 + $0xe0] sm:$0xff] %v2338_v3  ;;  %252 = vst [vmem:[#allocation2 + $0xe8] sm:$0x3] %v2338_v3  ;;  %v308_v32 = vld [vmem:[%s2508_s9 + $0xf8] sm:$0xff] }
  0x67   : > { %253 = vst [vmem:[#allocation2 + $0xf0] sm:$0xff] %v2338_v3  ;;  %254 = vst [vmem:[#allocation2 + $0xf8] sm:$0xff] %v2338_v3 }
  0x68   : > { %255 = vst [vmem:[#allocation2 + $0x100] sm:$0x3] %v2338_v3  ;;  %256 = vst [vmem:[#allocation2 + $0x108] sm:$0xff] %v2338_v3 }
  0x69   : > { %257 = vst [vmem:[#allocation2 + $0x110] sm:$0xff] %v2338_v3  ;;  %258 = vst [vmem:[#allocation2 + $0x118] sm:$0x3] %v2338_v3 }
  0x6a   : > { %259 = vst [vmem:[#allocation2 + $0x120] sm:$0xff] %v2338_v3  ;;  %260 = vst [vmem:[#allocation2 + $0x128] sm:$0xff] %v2338_v3 }
  0x6b   : > { %261 = vst [vmem:[#allocation2 + $0x130] sm:$0x3] %v2338_v3  ;;  %262 = vst [vmem:[#allocation2 + $0x138] sm:$0xff] %v2338_v3 }
  0x6c   : > { %263 = vst [vmem:[#allocation2 + $0x140] sm:$0xff] %v2338_v3  ;;  %264 = vst [vmem:[#allocation2 + $0x148] sm:$0x3] %v2338_v3 }
  0x6d   : > { %265 = vst [vmem:[#allocation2 + $0x150] sm:$0xff] %v2338_v3  ;;  %266 = vst [vmem:[#allocation2 + $0x158] sm:$0xff] %v2338_v3 }
  0x6e   : > { %267 = vst [vmem:[#allocation2 + $0x160] sm:$0x3] %v2338_v3  ;;  %268 = vst [vmem:[#allocation2 + $0x168] sm:$0xff] %v2338_v3 }
  0x6f   : > { %269 = vst [vmem:[#allocation2 + $0x170] sm:$0xff] %v2338_v3  ;;  %270 = vst [vmem:[#allocation2 + $0x178] sm:$0x3] %v2338_v3 }
  0x70   : > { %271 = vst [vmem:[#allocation2 + $0x180] sm:$0xff] %v2338_v3  ;;  %272 = vst [vmem:[#allocation2 + $0x188] sm:$0xff] %v2338_v3 }
  0x71   : > { %273 = vst [vmem:[#allocation2 + $0x190] sm:$0x3] %v2338_v3  ;;  %274 = vst [vmem:[#allocation2 + $0x198] sm:$0xff] %v2338_v3 }
  0x72   : > { %275 = vst [vmem:[#allocation2 + $0x1a0] sm:$0xff] %v2338_v3  ;;  %276 = vst [vmem:[#allocation2 + $0x1a8] sm:$0x3] %v2338_v3 }
  0x73   : > { %310 = vst [vmem:[#allocation2 + $0x19] sm:$0xff] %v277_v0  ;;  %311 = vst [vmem:[#allocation2 + $0x21] sm:$0xff] %v278_v1 }
  0x74   : > { %312 = vst [vmem:[#allocation2 + $0x31] sm:$0xff] %v279_v2  ;;  %313 = vst [vmem:[#allocation2 + $0x39] sm:$0xff] %v280_v4 }
  0x75   : > { %314 = vst [vmem:[#allocation2 + $0x49] sm:$0xff] %v281_v5  ;;  %315 = vst [vmem:[#allocation2 + $0x51] sm:$0xff] %v282_v6 }
  0x76   : > { %316 = vst [vmem:[#allocation2 + $0x61] sm:$0xff] %v283_v7  ;;  %317 = vst [vmem:[#allocation2 + $0x69] sm:$0xff] %v284_v8 }
  0x77   : > { %318 = vst [vmem:[#allocation2 + $0x79] sm:$0xff] %v285_v9  ;;  %319 = vst [vmem:[#allocation2 + $0x81] sm:$0xff] %v286_v10 }
  0x78   : > { %320 = vst [vmem:[#allocation2 + $0x91] sm:$0xff] %v287_v11  ;;  %321 = vst [vmem:[#allocation2 + $0x99] sm:$0xff] %v288_v12 }
  0x79   : > { %322 = vst [vmem:[#allocation2 + $0xa9] sm:$0xff] %v289_v13  ;;  %323 = vst [vmem:[#allocation2 + $0xb1] sm:$0xff] %v290_v14 }
  0x7a   : > { %324 = vst [vmem:[#allocation2 + $0xc1] sm:$0xff] %v291_v15  ;;  %325 = vst [vmem:[#allocation2 + $0xc9] sm:$0xff] %v292_v16 }
  0x7b   : > { %326 = vst [vmem:[#allocation2 + $0xd9] sm:$0xff] %v293_v17  ;;  %327 = vst [vmem:[#allocation2 + $0xe1] sm:$0xff] %v294_v18 }
  0x7c   : > { %328 = vst [vmem:[#allocation2 + $0xf1] sm:$0xff] %v295_v19  ;;  %329 = vst [vmem:[#allocation2 + $0xf9] sm:$0xff] %v296_v20 }
  0x7d   : > { %330 = vst [vmem:[#allocation2 + $0x109] sm:$0xff] %v297_v21  ;;  %331 = vst [vmem:[#allocation2 + $0x111] sm:$0xff] %v298_v22 }
  0x7e   : > { %332 = vst [vmem:[#allocation2 + $0x121] sm:$0xff] %v299_v23  ;;  %333 = vst [vmem:[#allocation2 + $0x129] sm:$0xff] %v300_v24 }
  0x7f   : > { %334 = vst [vmem:[#allocation2 + $0x139] sm:$0xff] %v301_v25  ;;  %335 = vst [vmem:[#allocation2 + $0x141] sm:$0xff] %v302_v26 }
  0x80   : > { %336 = vst [vmem:[#allocation2 + $0x151] sm:$0xff] %v303_v27  ;;  %337 = vst [vmem:[#allocation2 + $0x159] sm:$0xff] %v304_v28 }
  0x81   : > { %338 = vst [vmem:[#allocation2 + $0x169] sm:$0xff] %v305_v29  ;;  %339 = vst [vmem:[#allocation2 + $0x171] sm:$0xff] %v306_v30 }
  0x82   : > { %340 = vst [vmem:[#allocation2 + $0x181] sm:$0xff] %v307_v31  ;;  %341 = vst [vmem:[#allocation2 + $0x189] sm:$0xff] %v308_v32 }
  0x83 PF: > { %v578_v33 = vld [vmem:[#allocation6 + $0xf8] sm:$0xff]  ;;  %v577_v37 = vld [vmem:[#allocation6 + $0xf0] sm:$0xff]  ;;  %v576_v41 = vld [vmem:[#allocation6 + $0xe8] sm:$0xff]  ;;  %s1585_s25 = smul.u32 192, %s2316_s18  ;;  %vm399_vm0 = vcmask 1046528   ;;  %vm456_vm1 = vcmask 1045504  }
  0x84   : > { %v610_v34 = vld [vmem:[#allocation6 + $0x1f8] sm:$0xff]  ;;  %1596 = vmatprep.subr.mxu0 %v578_v33  ;;  %v609_v38 = vld [vmem:[#allocation6 + $0x1f0] sm:$0xff]  ;;  %v608_v42 = vld [vmem:[#allocation6 + $0x1e8] sm:$0xff]  ;;  %s1595_s24 = sshll.u32 %s2316_s18, 4  ;;  %s1590_s23 = sshll.u32 %s2320_s19, 5 }
  0x85   : > { %v562_v35 = vld [vmem:[#allocation6 + $0x78] sm:$0xff]  ;;  %1676 = vmatprep.subr.mxu1 %v610_v34  ;;  %v561_v39 = vld [vmem:[#allocation6 + $0x70] sm:$0xff]  ;;  %v560_v43 = vld [vmem:[#allocation6 + $0x68] sm:$0xff]  ;;  %s2557_s27 = scalar_lea.vmem [#allocation2], %s1585_s25  ;;  %s1469_s18 = sadd.s32 %s1595_s24, %s1590_s23 }
  0x86   : > { %v594_v36 = vld [vmem:[#allocation6 + $0x178] sm:$0xff]  ;;  %1597 = vmatpush3.msra.mxu0 %v562_v35  ;;  %v593_v40 = vld [vmem:[#allocation6 + $0x170] sm:$0xff]  ;;  %v592_v44 = vld [vmem:[#allocation6 + $0x168] sm:$0xff]  ;;  %s1591_s19 = sshll.u32 %s1469_s18, 7  ;;  %s1472_s26 = sshll.u32 %s2521_s30, 4  ;;  %s3084_s26 = int_to_ptr.vmem [resolvable:$true] %s1472_s26 }
  0x87   : > { %1677 = vmatpush3.msra.mxu1 %v594_v36  ;;  %1598 = vmatprep.subr.mxu0 %v577_v37  ;;  %v575_v45 = vld [vmem:[#allocation6 + $0xe0] sm:$0xff]  ;;  %v574_v49 = vld [vmem:[#allocation6 + $0xd8] sm:$0xff]  ;;  %v573_v53 = vld [vmem:[#allocation6 + $0xd0] sm:$0xff]  ;;  %s3222_s12 = sld [smem:[#allocation37_spill]]  ;;  %s3092_s5 = scalar_lea.sflag [#allocation5], %s215_s3 }
  0x88   : > { %1678 = vmatprep.subr.mxu1 %v609_v38  ;;  %1599 = vmatpush3.msra.mxu0 %v561_v39  ;;  %v607_v46 = vld [vmem:[#allocation6 + $0x1e0] sm:$0xff]  ;;  %v606_v50 = vld [vmem:[#allocation6 + $0x1d8] sm:$0xff]  ;;  %v605_v54 = vld [vmem:[#allocation6 + $0x1d0] sm:$0xff]  ;;  %s2208_s6 = scalar_lea.vmem %s3084_s26, 2048  ;;  %p3224_p3 = scmp.ne.s32.totalorder %s3171_s28, 0 }
  0x89   : > { %1679 = vmatpush3.msra.mxu1 %v593_v40  ;;  %1600 = vmatprep.subr.mxu0 %v576_v41  ;;  %v559_v47 = vld [vmem:[#allocation6 + $0x60] sm:$0xff]  ;;  %v558_v51 = vld [vmem:[#allocation6 + $0x58] sm:$0xff]  ;;  %v557_v55 = vld [vmem:[#allocation6 + $0x50] sm:$0xff]  ;;  %p2209_p1 = scmp.ne.s32.totalorder %s3084_s26, %s2208_s6  ;;  %s2339_s9 = smov [#allocation8]  }
  0x8a   : > { %1680 = vmatprep.subr.mxu1 %v608_v42  ;;  %v591_v48 = vld [vmem:[#allocation6 + $0x160] sm:$0xff]  ;;  %1601 = vmatpush3.msra.mxu0 %v560_v43  ;;  %v590_v52 = vld [vmem:[#allocation6 + $0x158] sm:$0xff]  ;;  %v589_v56 = vld [vmem:[#allocation6 + $0x150] sm:$0xff]  ;;  %s2212_s29 = sshll.u32 %s2339_s9, 4  ;;  %s2213_s29 = int_to_ptr.vmem [resolvable:$false] %s2212_s29 }
  0x8b   : > { %1681 = vmatpush3.msra.mxu1 %v592_v44  ;;  %1602 = vmatprep.subr.mxu0 %v575_v45  ;;  %v572_v57 = vld [vmem:[#allocation6 + $0xc8] sm:$0xff]  ;;  %v571_v61 = vld [vmem:[#allocation6 + $0xc0] sm:$0xff]  ;;  %v570_v1 = vld [vmem:[#allocation6 + $0xb8] sm:$0xff]  ;;  %p2210_p0 = pnand %p2209_p1, %p3224_p3  ;;  %s2214_s25 = scalar_lea.vmem %s2213_s29, 4096 }
  0x8c   : > { %1682 = vmatprep.subr.mxu1 %v607_v46  ;;  %1603 = vmatpush3.msra.mxu0 %v559_v47  ;;  %v604_v58 = vld [vmem:[#allocation6 + $0x1c8] sm:$0xff]  ;;  %v603_v62 = vld [vmem:[#allocation6 + $0x1c0] sm:$0xff]  ;;  %v602_v2 = vld [vmem:[#allocation6 + $0x1b8] sm:$0xff]  ;;  %p2215_p5 = scmp.lt.s32.totalorder %s3084_s26, %s2213_s29  ;;  %p2216_p6 = scmp.lt.s32.totalorder %s2214_s25, %s2208_s6 }
  0x8d   : > { %1683 = vmatpush3.msra.mxu1 %v591_v48  ;;  %1604 = vmatprep.subr.mxu0 %v574_v49  ;;  %v556_v59 = vld [vmem:[#allocation6 + $0x48] sm:$0xff]  ;;  %v555_v63 = vld [vmem:[#allocation6 + $0x40] sm:$0xff]  ;;  %v554_v3 = vld [vmem:[#allocation6 + $0x38] sm:$0xff]  ;;  %s3223_s11 = smov %s3222_s12  ;;  %s3082_s4 = scalar_lea.hbm %s3222_s12, %s1591_s19 }
  0x8e   : > { %1684 = vmatprep.subr.mxu1 %v606_v50  ;;  %1605 = vmatpush3.msra.mxu0 %v558_v51  ;;  %v588_v60 = vld [vmem:[#allocation6 + $0x148] sm:$0xff]  ;;  %v587_v0 = vld [vmem:[#allocation6 + $0x140] sm:$0xff]  ;;  %v586_v4 = vld [vmem:[#allocation6 + $0x138] sm:$0xff]  ;;  %p2211_p13 = pneg %p2210_p0  ;;  %p2217_p8 = por %p2216_p6, %p2215_p5 }
  0x8f   : > { %1685 = vmatpush3.msra.mxu1 %v590_v52  ;;  %1606 = vmatprep.subr.mxu0 %v573_v53  ;;  %v569_v5 = vld [vmem:[#allocation6 + $0xb0] sm:$0xff]  ;;  %v568_v9 = vld [vmem:[#allocation6 + $0xa8] sm:$0xff]  ;;  %v567_v13 = vld [vmem:[#allocation6 + $0xa0] sm:$0xff] }
  0x90   : > { %1686 = vmatprep.subr.mxu1 %v605_v54  ;;  %1607 = vmatpush3.msra.mxu0 %v557_v55  ;;  %v601_v6 = vld [vmem:[#allocation6 + $0x1b0] sm:$0xff]  ;;  %v600_v10 = vld [vmem:[#allocation6 + $0x1a8] sm:$0xff]  ;;  %v599_v14 = vld [vmem:[#allocation6 + $0x1a0] sm:$0xff]  ;;  %p2218_p7 = pnand %p2217_p8, %p2211_p13 }
  0x91   : > { %1687 = vmatpush3.msra.mxu1 %v589_v56  ;;  %1608 = vmatprep.subr.mxu0 %v572_v57  ;;  %v553_v7 = vld [vmem:[#allocation6 + $0x30] sm:$0xff]  ;;  %v552_v11 = vld [vmem:[#allocation6 + $0x28] sm:$0xff]  ;;  %v551_v15 = vld [vmem:[#allocation6 + $0x20] sm:$0xff] }
  0x92   : > { %1688 = vmatprep.subr.mxu1 %v604_v58  ;;  %1609 = vmatpush3.msra.mxu0 %v556_v59  ;;  %v585_v8 = vld [vmem:[#allocation6 + $0x130] sm:$0xff]  ;;  %v584_v12 = vld [vmem:[#allocation6 + $0x128] sm:$0xff]  ;;  %v583_v16 = vld [vmem:[#allocation6 + $0x120] sm:$0xff] }
  0x93   : > { %1689 = vmatpush3.msra.mxu1 %v588_v60  ;;  %1610 = vmatprep.subr.mxu0 %v571_v61  ;;  %v566_v17 = vld [vmem:[#allocation6 + $0x98] sm:$0xff]  ;;  %v345_v19 = vld [vmem:[%s2557_s27] sm:$0xff]  ;;  %v564_v29 = vld [vmem:[#allocation6 + $0x88] sm:$0xff] }
  0x94   : > { %1690 = vmatprep.subr.mxu1 %v603_v62  ;;  %1611 = vmatpush3.msra.mxu0 %v555_v63  ;;  %v598_v18 = vld [vmem:[#allocation6 + $0x198] sm:$0xff]  ;;  %v565_v23 = vld [vmem:[#allocation6 + $0x90] sm:$0xff]  ;;  %v400_v27 = vrot.slane %v345_v19, 1  ;;  %v596_v30 = vld [vmem:[#allocation6 + $0x188] sm:$0xff]  ;;  %v457_v33 = vrot.slane %v345_v19, 2 }
  0x95   : > { %1691 = vmatpush3.msra.mxu1 %v587_v0  ;;  %1612 = vmatprep.subr.mxu0 %v570_v1  ;;  %v2561_v20 = vld [vmem:[%s2557_s27 + $0x8] sm:$0xff]  ;;  %v597_v24 = vld [vmem:[#allocation6 + $0x190] sm:$0xff]  ;;  %v548_v31 = vld [vmem:[#allocation6 + $0x8] sm:$0xff] }
  0x96   : > { %1692 = vmatprep.subr.mxu1 %v602_v2  ;;  %1613 = vmatpush3.msra.mxu0 %v554_v3  ;;  %v550_v21 = vld [vmem:[#allocation6 + $0x18] sm:$0xff]  ;;  %v549_v25 = vld [vmem:[#allocation6 + $0x10] sm:$0xff]  ;;  %v401_v28 = vrot.slane %v2561_v20, 1  ;;  %v580_v32 = vld [vmem:[#allocation6 + $0x108] sm:$0xff]  ;;  %v458_v34 = vrot.slane %v2561_v20, 2 }
  0x97   : > { %1693 = vmatpush3.msra.mxu1 %v586_v4  ;;  %1614 = vmatprep.subr.mxu0 %v569_v5  ;;  %v582_v22 = vld [vmem:[#allocation6 + $0x118] sm:$0xff]  ;;  %v581_v26 = vld [vmem:[#allocation6 + $0x110] sm:$0xff]  ;;  %v347_v35 = vld [vmem:[%s2557_s27 + $0x10] sm:$0x3] }
  0x98   : > { %1694 = vmatprep.subr.mxu1 %v601_v6  ;;  %1615 = vmatpush3.msra.mxu0 %v553_v7  ;;  %v563_v36 = vld [vmem:[#allocation6 + $0x80] sm:$0xff]  ;;  %v402_v39 = vsel %vm399_vm0, %v400_v27, %v401_v28  ;;  %v348_v41 = vld [vmem:[%s2557_s27 + $0x18] sm:$0xff]  ;;  %v403_v42 = vrot.slane %v347_v35, 1  ;;  %v459_v43 = vsel %vm456_vm1, %v457_v33, %v458_v34  ;;  %v2570_v44 = vld [vmem:[%s2557_s27 + $0x20] sm:$0xff]  ;;  %v460_v45 = vrot.slane %v347_v35, 2 }
  0x99   : > { %1695 = vmatpush3.msra.mxu1 %v585_v8  ;;  %1616 = vmatprep.subr.mxu0 %v568_v9  ;;  %v595_v37 = vld [vmem:[#allocation6 + $0x180] sm:$0xff]  ;;  %v642_v46 = vld [vmem:[#allocation6 + $0x2f8] sm:$0xff]  ;;  %v405_v51 = vrot.slane %v348_v41, 1  ;;  %v406_v52 = vrot.slane %v2570_v44, 1  ;;  %v462_v54 = vrot.slane %v348_v41, 2  ;;  %v463_v55 = vrot.slane %v2570_v44, 2 }
  0x9a   : > { %1696 = vmatprep.subr.mxu1 %v600_v10  ;;  %1617 = vmatpush3.msra.mxu0 %v552_v11  ;;  %v547_v38 = vld [vmem:[#allocation6] sm:$0xff]  ;;  %v674_v47 = vld [vmem:[#allocation6 + $0x3f8] sm:$0xff]  ;;  %v404_v50 = vsel %vm399_vm0, %v401_v28, %v403_v42  ;;  %v461_v53 = vsel %vm456_vm1, %v458_v34, %v460_v45  ;;  %v641_v57 = vld [vmem:[#allocation6 + $0x2f0] sm:$0xff] }
  0x9b   : > { %1697 = vmatpush3.msra.mxu1 %v584_v12  ;;  %1618 = vmatprep.subr.mxu0 %v567_v13  ;;  %v579_v40 = vld [vmem:[#allocation6 + $0x100] sm:$0xff]  ;;  %v626_v48 = vld [vmem:[#allocation6 + $0x278] sm:$0xff]  ;;  %v673_v58 = vld [vmem:[#allocation6 + $0x3f0] sm:$0xff]  ;;  %v2580_v61 = vsel %vm399_vm0, %v405_v51, %v406_v52  ;;  %v2586_v0 = vsel %vm456_vm1, %v462_v54, %v463_v55 }
  0x9c   : > { %1698 = vmatprep.subr.mxu1 %v599_v14  ;;  %1619 = vmatpush3.msra.mxu0 %v551_v15  ;;  %v658_v49 = vld [vmem:[#allocation6 + $0x378] sm:$0xff]  ;;  %v625_v59 = vld [vmem:[#allocation6 + $0x270] sm:$0xff]  ;;  %v2583_v62 = vld [vmem:[%s2557_s27 + $0x30] sm:$0xff] }
  0x9d   : > { %1699 = vmatpush3.msra.mxu1 %v583_v16  ;;  %1620 = vmatprep.subr.mxu0 %v566_v17  ;;  %v350_v56 = vld [vmem:[%s2557_s27 + $0x28] sm:$0x3]  ;;  %v657_v60 = vld [vmem:[#allocation6 + $0x370] sm:$0xff]  ;;  %v2589_v1 = vld [vmem:[%s2557_s27 + $0x38] sm:$0xff]  ;;  %v410_v8 = vrot.slane %v2583_v62, 1  ;;  %v467_v11 = vrot.slane %v2583_v62, 2 }
  0x9e   : > { %1700 = vmatprep.subr.mxu1 %v598_v18  ;;  %1621 = vmatpush3.msra.mxu0 %v550_v21  ;;  %v408_v63 = vrot.slane %v350_v56, 1  ;;  %v465_v2 = vrot.slane %v350_v56, 2  ;;  %v640_v3 = vld [vmem:[#allocation6 + $0x2e8] sm:$0xff]  ;;  %v411_v9 = vrot.slane %v2589_v1, 1  ;;  %v468_v12 = vrot.slane %v2589_v1, 2  ;;  %v639_v14 = vld [vmem:[#allocation6 + $0x2e0] sm:$0xff] }
  0x9f   : > { %1701 = vmatpush3.msra.mxu1 %v582_v22  ;;  %1622 = vmatprep.subr.mxu0 %v565_v23  ;;  %v672_v4 = vld [vmem:[#allocation6 + $0x3e8] sm:$0xff]  ;;  %v353_v13 = vld [vmem:[%s2557_s27 + $0x40] sm:$0x3]  ;;  %v671_v15 = vld [vmem:[#allocation6 + $0x3e0] sm:$0xff] }
  0xa0   : > { %1702 = vmatprep.subr.mxu1 %v597_v24  ;;  %1623 = vmatpush3.msra.mxu0 %v549_v25  ;;  %v624_v5 = vld [vmem:[#allocation6 + $0x268] sm:$0xff]  ;;  %v2595_v7 = vsel %vm399_vm0, %v406_v52, %v408_v63  ;;  %v2600_v10 = vsel %vm456_vm1, %v463_v55, %v465_v2  ;;  %v623_v16 = vld [vmem:[#allocation6 + $0x260] sm:$0xff]  ;;  %v2610_v18 = vsel %vm399_vm0, %v410_v8, %v411_v9  ;;  %v470_v23 = vrot.slane %v353_v13, 2  ;;  %v638_v24 = vld [vmem:[#allocation6 + $0x2d8] sm:$0xff] }
  0xa1   : > { %1703 = vmatpush3.msra.mxu1 %v581_v26  ;;  %1624 = vmatprep.subr.mxu0 %v564_v29  ;;  %v656_v6 = vld [vmem:[#allocation6 + $0x368] sm:$0xff]  ;;  %v655_v17 = vld [vmem:[#allocation6 + $0x360] sm:$0xff]  ;;  %v2616_v21 = vsel %vm456_vm1, %v467_v11, %v468_v12  ;;  %v670_v25 = vld [vmem:[#allocation6 + $0x3d8] sm:$0xff] }
  0xa2   : > { %1704 = vmatprep.subr.mxu1 %v596_v30  ;;  %1625 = vmatpush3.msra.mxu0 %v548_v31  ;;  %v2619_v22 = vld [vmem:[%s2557_s27 + $0x50] sm:$0xff]  ;;  %v2622_v26 = vld [vmem:[%s2557_s27 + $0xc0] sm:$0xff]  ;;  %v622_v27 = vld [vmem:[#allocation6 + $0x258] sm:$0xff] }
  0xa3   : > { %1705 = vmatpush3.msra.mxu1 %v580_v32  ;;  %1626 = vmatprep.subr.mxu0 %v563_v36  ;;  %v654_v28 = vld [vmem:[#allocation6 + $0x358] sm:$0xff]  ;;  %v516_v30 = vrot.slane %v2622_v26, 1  ;;  %v416_v32 = vrot.slane %v2619_v22, 1  ;;  %v356_v34 = vld [vmem:[%s2557_s27 + $0x58] sm:$0x3]  ;;  %v523_v36 = vrot.slane %v2622_v26, 2 }
  0xa4   : > { %1706 = vmatprep.subr.mxu1 %v595_v37  ;;  %1627 = vmatpush3.msra.mxu0 %v547_v38  ;;  %v2637_v35 = vld [vmem:[%s2557_s27 + $0xc8] sm:$0xff]  ;;  %v2641_v37 = vsel %vm456_vm1, %v468_v12, %v470_v23  ;;  %v473_v38 = vrot.slane %v2619_v22, 2  ;;  %v669_v42 = vld [vmem:[#allocation6 + $0x3d0] sm:$0xff]  ;;  %v418_v45 = vrot.slane %v356_v34, 1  ;;  %v475_v51 = vrot.slane %v356_v34, 2  ;;  %v668_v54 = vld [vmem:[#allocation6 + $0x3c8] sm:$0xff] }
  0xa5   : > { %762 = vmatprep.mubr.f32.mxu0 %v402_v39  ;;  %1707 = vmatpush3.msra.mxu1 %v579_v40  ;;  %v517_v39 = vrot.slane %v2637_v35, 1  ;;  %v524_v40 = vrot.slane %v2637_v35, 2  ;;  %v620_v63 = vld [vmem:[#allocation6 + $0x248] sm:$0xff]  ;;  %v374_v12 = vld [vmem:[%s2557_s27 + $0xe8] sm:$0x3] }
  0xa6   : > { %907 = vmatprep.mubr.f32.mxu1 %v348_v41  ;;  %763 = vmatmul.mubr.f32.vlgmr.msra.gmra.mxu0 %v345_v19  ;;  %v2613_v19 = vld [vmem:[%s2557_s27 + $0x48] sm:$0xff]  ;;  %v652_v2 = vld [vmem:[#allocation6 + $0x348] sm:$0xff]  ;;  %v543_v23 = vrot.slane %v374_v12, 2 }
  0xa7   : > { %908 = vmatmul.mubr.f32.vlgmr.msra.gmra.mxu1 %v459_v43  ;;  %1756 = vmatprep.subr.mxu0 %v642_v46  ;;  %v415_v29 = vrot.slane %v2613_v19, 1  ;;  %v472_v33 = vrot.slane %v2613_v19, 2  ;;  %v621_v43 = vld [vmem:[#allocation6 + $0x250] sm:$0xff]  ;;  %v2649_v46 = vld [vmem:[%s2557_s27 + $0x68] sm:$0xff] }
  0xa8   : > { %1836 = vmatprep.subr.mxu1 %v674_v47  ;;  %1757 = vmatpush3.msra.mxu0 %v626_v48  ;;  %v2652_v47 = vsel %vm399_vm0, %v516_v30, %v517_v39  ;;  %v2655_v48 = vsel %vm456_vm1, %v523_v36, %v524_v40  ;;  %v421_v56 = vrot.slane %v2649_v46, 1  ;;  %v651_v30 = vld [vmem:[#allocation6 + $0x340] sm:$0xff]  ;;  %v2721_v36 = vld [vmem:[%s2557_s27 + $0x78] sm:$0xff] }
  0xa9   : > { %1837 = vmatpush3.msra.mxu1 %v658_v49  ;;  %767 = vmatprep.mubr.f32.mxu0 %v404_v50  ;;  %v2660_v49 = vsel %vm399_vm0, %v415_v29, %v416_v32  ;;  %v2663_v50 = vld [vmem:[%s2557_s27 + $0x60] sm:$0xff]  ;;  %v2666_v52 = vsel %vm456_vm1, %v472_v33, %v473_v38  ;;  %v619_v29 = vld [vmem:[#allocation6 + $0x240] sm:$0xff] }
  0xaa   : > { %912 = vmatprep.mubr.f32.mxu1 %v2570_v44  ;;  %768 = vmatmul.mubr.f32.gmra.mxu0 %v2561_v20  ;;  %v413_v20 = vrot.slane %v353_v13, 1  ;;  %v420_v55 = vrot.slane %v2663_v50, 1 }
  0xab   : > { %913 = vmatmul.mubr.f32.gmra.mxu1 %v461_v53  ;;  %1758 = vmatprep.subr.mxu0 %v641_v57  ;;  %v636_v53 = vld [vmem:[#allocation6 + $0x2c8] sm:$0xff]  ;;  %v477_v57 = vrot.slane %v2663_v50, 2 }
  0xac   : > { %1838 = vmatprep.subr.mxu1 %v673_v58  ;;  %1759 = vmatpush3.msra.mxu0 %v625_v59  ;;  %v2631_v31 = vsel %vm399_vm0, %v411_v9, %v413_v20  ;;  %v478_v58 = vrot.slane %v2649_v46, 2  ;;  %v371_v59 = vld [vmem:[%s2557_s27 + $0xd0] sm:$0x3]  ;;  %v2688_v9 = vsel %vm456_vm1, %v473_v38, %v475_v51  ;;  %v536_v20 = vrot.slane %v374_v12, 1 }
  0xad   : > { %1839 = vmatpush3.msra.mxu1 %v657_v60  ;;  %772 = vmatprep.mubr.f32.mxu0 %v2580_v61  ;;  %v2674_v60 = vld [vmem:[%s2557_s27 + $0xd8] sm:$0xff]  ;;  %v526_v8 = vrot.slane %v371_v59, 2  ;;  %v2718_v34 = vsel %vm399_vm0, %v420_v55, %v421_v56 }
  0xae   : > { %917 = vmatprep.mubr.f32.mxu1 %v2583_v62  ;;  %773 = vmatmul.mubr.f32.gmra.mxu0 %v348_v41  ;;  %v637_v41 = vld [vmem:[#allocation6 + $0x2d0] sm:$0xff]  ;;  %v540_v13 = vrot.slane %v2674_v60, 2 }
  0xaf   : > { %918 = vmatmul.mubr.f32.gmra.mxu1 %v2586_v0  ;;  %1760 = vmatprep.subr.mxu0 %v640_v3  ;;  %v2679_v3 = vsel %vm399_vm0, %v416_v32, %v418_v45  ;;  %v650_v45 = vld [vmem:[#allocation6 + $0x338] sm:$0xff] }
  0xb0   : > { %1840 = vmatprep.subr.mxu1 %v672_v4  ;;  %1761 = vmatpush3.msra.mxu0 %v624_v5  ;;  %v519_v4 = vrot.slane %v371_v59, 1  ;;  %v2682_v5 = vld [vmem:[%s2557_s27 + $0xe0] sm:$0xff] }
  0xb1   : > { %1841 = vmatpush3.msra.mxu1 %v656_v6  ;;  %777 = vmatprep.mubr.f32.mxu0 %v2595_v7  ;;  %v533_v6 = vrot.slane %v2674_v60, 1  ;;  %v534_v11 = vrot.slane %v2682_v5, 1 }
  0xb2   : > { %922 = vmatprep.mubr.f32.mxu1 %v2589_v1  ;;  %778 = vmatmul.mubr.f32.gmra.mxu0 %v2570_v44  ;;  %v653_v44 = vld [vmem:[#allocation6 + $0x350] sm:$0xff] }
  0xb3   : > { %923 = vmatmul.mubr.f32.gmra.mxu1 %v2600_v10  ;;  %1762 = vmatprep.subr.mxu0 %v639_v14  ;;  %v541_v14 = vrot.slane %v2682_v5, 2  ;;  %v2710_v32 = vsel %vm399_vm0, %v534_v11, %v536_v20  ;;  %v664_v20 = vld [vmem:[#allocation6 + $0x3a8] sm:$0xff] }
  0xb4   : > { %1842 = vmatprep.subr.mxu1 %v671_v15  ;;  %1763 = vmatpush3.msra.mxu0 %v623_v16  ;;  %v359_v15 = vld [vmem:[%s2557_s27 + $0x70] sm:$0x3]  ;;  %v2696_v16 = vsel %vm399_vm0, %v517_v39, %v519_v4  ;;  %v2726_v39 = vsel %vm456_vm1, %v477_v57, %v478_v58  ;;  %v482_v57 = vrot.slane %v2721_v36, 2  ;;  %v617_v4 = vld [vmem:[#allocation6 + $0x230] sm:$0xff] }
  0xb5   : > { %1843 = vmatpush3.msra.mxu1 %v655_v17  ;;  %782 = vmatprep.mubr.f32.mxu0 %v2610_v18  ;;  %v2699_v17 = vsel %vm456_vm1, %v524_v40, %v526_v8  ;;  %v2713_v33 = vsel %vm456_vm1, %v541_v14, %v543_v23  ;;  %v423_v38 = vrot.slane %v359_v15, 1  ;;  %v2729_v40 = vld [vmem:[%s2557_s27 + $0x80] sm:$0xff]  ;;  %v2756_v8 = vld [vmem:[%s2557_s27 + $0x90] sm:$0xff]  ;;  %v616_v23 = vld [vmem:[#allocation6 + $0x228] sm:$0xff] }
  0xb6   : > { %927 = vmatprep.mubr.f32.mxu1 %v2613_v19  ;;  %783 = vmatmul.mubr.f32.gmra.mxu0 %v2583_v62  ;;  %3182 = vst [vmem:[#allocation17_spill] sm:$0xff] %v2713_v33  ;;  %v483_v59 = vrot.slane %v2729_v40, 2  ;;  %v644_v33 = vld [vmem:[#allocation6 + $0x308] sm:$0xff] }
  0xb7   : > { %928 = vmatmul.mubr.f32.gmra.mxu1 %v2616_v21  ;;  %1764 = vmatprep.subr.mxu0 %v638_v24  ;;  %v635_v24 = vld [vmem:[#allocation6 + $0x2c0] sm:$0xff]  ;;  %v2736_v51 = vsel %vm399_vm0, %v421_v56, %v423_v38  ;;  %v633_v56 = vld [vmem:[#allocation6 + $0x2b0] sm:$0xff] }
  0xb8   : > { %1844 = vmatprep.subr.mxu1 %v670_v25  ;;  %1765 = vmatpush3.msra.mxu0 %v622_v27  ;;  %v667_v25 = vld [vmem:[#allocation6 + $0x3c0] sm:$0xff]  ;;  %v2702_v27 = vsel %vm399_vm0, %v533_v6, %v534_v11  ;;  %v649_v6 = vld [vmem:[#allocation6 + $0x330] sm:$0xff]  ;;  %v2759_v12 = vsel %vm456_vm1, %v482_v57, %v483_v59 }
  0xb9   : > { %1845 = vmatpush3.msra.mxu1 %v654_v28  ;;  %787 = vmatprep.mubr.f32.mxu0 %v2631_v31  ;;  %v2705_v28 = vsel %vm456_vm1, %v540_v13, %v541_v14  ;;  %v2762_v13 = vld [vmem:[%s2557_s27 + $0x98] sm:$0xff] }
  0xba   : > { %932 = vmatprep.mubr.f32.mxu1 %v2619_v22  ;;  %788 = vmatmul.mubr.f32.gmra.mxu0 %v2589_v1 }
  0xbb   : > { %933 = vmatmul.mubr.f32.gmra.mxu1 %v2641_v37  ;;  %1766 = vmatprep.subr.mxu0 %v637_v41  ;;  %v480_v41 = vrot.slane %v359_v15, 2  ;;  %v632_v15 = vld [vmem:[#allocation6 + $0x2a8] sm:$0xff] }
  0xbc   : > { %1846 = vmatprep.subr.mxu1 %v669_v42  ;;  %1767 = vmatpush3.msra.mxu0 %v621_v43  ;;  %v634_v42 = vld [vmem:[#allocation6 + $0x2b8] sm:$0xff] }
  0xbd   : > { %1847 = vmatpush3.msra.mxu1 %v653_v44  ;;  %792 = vmatprep.mubr.f32.mxu0 %v2660_v49  ;;  %v666_v43 = vld [vmem:[#allocation6 + $0x3b8] sm:$0xff]  ;;  %v2743_v55 = vsel %vm456_vm1, %v478_v58, %v480_v41  ;;  %v487_v41 = vrot.slane %v2756_v8, 2 }
  0xbe   : > { %937 = vmatprep.mubr.f32.mxu1 %v2663_v50  ;;  %793 = vmatmul.mubr.f32.gmra.mxu0 %v2613_v19  ;;  %v618_v44 = vld [vmem:[#allocation6 + $0x238] sm:$0xff] }
  0xbf   : > { %938 = vmatmul.mubr.f32.gmra.mxu1 %v2666_v52  ;;  %1768 = vmatprep.subr.mxu0 %v636_v53  ;;  %v425_v53 = vrot.slane %v2721_v36, 1 }
  0xc0   : > { %1848 = vmatprep.subr.mxu1 %v668_v54  ;;  %1769 = vmatpush3.msra.mxu0 %v620_v63  ;;  %v426_v54 = vrot.slane %v2729_v40, 1  ;;  %v362_v63 = vld [vmem:[%s2557_s27 + $0x88] sm:$0x3] }
  0xc1   : > { %1849 = vmatpush3.msra.mxu1 %v652_v2  ;;  %797 = vmatprep.mubr.f32.mxu0 %v2679_v3  ;;  %v665_v2 = vld [vmem:[#allocation6 + $0x3b0] sm:$0xff]  ;;  %v428_v11 = vrot.slane %v362_v63, 1  ;;  %v485_v14 = vrot.slane %v362_v63, 2 }
  0xc2   : > { %942 = vmatprep.mubr.f32.mxu1 %v2649_v46  ;;  %798 = vmatmul.mubr.f32.gmra.mxu0 %v2619_v22  ;;  %v2753_v58 = vsel %vm399_vm0, %v425_v53, %v426_v54  ;;  %v615_v53 = vld [vmem:[#allocation6 + $0x220] sm:$0xff] }
  0xc3   : > { %943 = vmatmul.mubr.f32.gmra.mxu1 %v2688_v9  ;;  %1770 = vmatprep.subr.mxu0 %v635_v24  ;;  %v648_v24 = vld [vmem:[#allocation6 + $0x328] sm:$0xff]  ;;  %v2774_v38 = vsel %vm456_vm1, %v483_v59, %v485_v14  ;;  %v2787_v59 = vld [vmem:[%s2557_s27 + $0xa8] sm:$0xff] }
  0xc4   : > { %1850 = vmatprep.subr.mxu1 %v667_v25  ;;  %1771 = vmatpush3.msra.mxu0 %v619_v29  ;;  %v2769_v25 = vsel %vm399_vm0, %v426_v54, %v428_v11  ;;  %v430_v29 = vrot.slane %v2756_v8, 1  ;;  %v647_v54 = vld [vmem:[#allocation6 + $0x320] sm:$0xff]  ;;  %v662_v11 = vld [vmem:[#allocation6 + $0x398] sm:$0xff] }
  0xc5   : > { %1851 = vmatpush3.msra.mxu1 %v651_v30  ;;  %802 = vmatprep.mubr.f32.mxu0 %v2718_v34  ;;  %v431_v30 = vrot.slane %v2762_v13, 1  ;;  %v614_v14 = vld [vmem:[#allocation6 + $0x218] sm:$0xff] }
  0xc6   : > { %947 = vmatprep.mubr.f32.mxu1 %v2721_v36  ;;  %803 = vmatmul.mubr.f32.gmra.mxu0 %v2663_v50 }
  0xc7   : > { %948 = vmatmul.mubr.f32.gmra.mxu1 %v2726_v39  ;;  %1772 = vmatprep.subr.mxu0 %v634_v42  ;;  %v488_v42 = vrot.slane %v2762_v13, 2  ;;  %v2784_v57 = vsel %vm399_vm0, %v430_v29, %v431_v30 }
  0xc8   : > { %1852 = vmatprep.subr.mxu1 %v666_v43  ;;  %1773 = vmatpush3.msra.mxu0 %v618_v44  ;;  %v365_v43 = vld [vmem:[%s2557_s27 + $0xa0] sm:$0x3]  ;;  %v631_v44 = vld [vmem:[#allocation6 + $0x2a0] sm:$0xff] }
  0xc9   : > { %1853 = vmatpush3.msra.mxu1 %v650_v45  ;;  %807 = vmatprep.mubr.f32.mxu0 %v2736_v51  ;;  %v663_v45 = vld [vmem:[#allocation6 + $0x3a0] sm:$0xff]  ;;  %v433_v63 = vrot.slane %v365_v43, 1 }
  0xca   : > { %952 = vmatprep.mubr.f32.mxu1 %v2729_v40  ;;  %808 = vmatmul.mubr.f32.gmra.mxu0 %v2649_v46 }
  0xcb   : > { %953 = vmatmul.mubr.f32.gmra.mxu1 %v2743_v55  ;;  %1774 = vmatprep.subr.mxu0 %v633_v56  ;;  %v2790_v56 = vsel %vm456_vm1, %v487_v41, %v488_v42  ;;  %v492_v41 = vrot.slane %v2787_v59, 2 }
  0xcc   : > { %1854 = vmatprep.subr.mxu1 %v665_v2  ;;  %1775 = vmatpush3.msra.mxu0 %v617_v4  ;;  %v2793_v2 = vld [vmem:[%s2557_s27 + $0xb0] sm:$0xff]  ;;  %v490_v4 = vrot.slane %v365_v43, 2 }
  0xcd   : > { %1855 = vmatpush3.msra.mxu1 %v649_v6  ;;  %812 = vmatprep.mubr.f32.mxu0 %v2753_v58  ;;  %v630_v6 = vld [vmem:[#allocation6 + $0x298] sm:$0xff]  ;;  %v493_v43 = vrot.slane %v2793_v2, 2 }
  0xce   : > { %957 = vmatprep.mubr.f32.mxu1 %v2756_v8  ;;  %813 = vmatmul.mubr.f32.gmra.mxu0 %v2721_v36  ;;  %v2805_v29 = vsel %vm456_vm1, %v488_v42, %v490_v4 }
  0xcf   : > { %958 = vmatmul.mubr.f32.gmra.mxu1 %v2759_v12  ;;  %1776 = vmatprep.subr.mxu0 %v632_v15  ;;  %v646_v15 = vld [vmem:[#allocation6 + $0x318] sm:$0xff]  ;;  %v2818_v4 = vsel %vm456_vm1, %v492_v41, %v493_v43 }
  0xd0   : > { %1856 = vmatprep.subr.mxu1 %v664_v20  ;;  %1777 = vmatpush3.msra.mxu0 %v616_v23  ;;  %v2800_v20 = vsel %vm399_vm0, %v431_v30, %v433_v63  ;;  %v435_v23 = vrot.slane %v2787_v59, 1  ;;  %v613_v30 = vld [vmem:[#allocation6 + $0x210] sm:$0xff] }
  0xd1   : > { %1857 = vmatpush3.msra.mxu1 %v648_v24  ;;  %817 = vmatprep.mubr.f32.mxu0 %v2769_v25  ;;  %v436_v24 = vrot.slane %v2793_v2, 1 }
  0xd2   : > { %962 = vmatprep.mubr.f32.mxu1 %v2762_v13  ;;  %818 = vmatmul.mubr.f32.gmra.mxu0 %v2729_v40 }
  0xd3   : > { %963 = vmatmul.mubr.f32.gmra.mxu1 %v2774_v38  ;;  %1778 = vmatprep.subr.mxu0 %v631_v44  ;;  %v368_v44 = vld [vmem:[%s2557_s27 + $0xb8] sm:$0x3]  ;;  %v2815_v42 = vsel %vm399_vm0, %v435_v23, %v436_v24 }
  0xd4   : > { %1858 = vmatprep.subr.mxu1 %v663_v45  ;;  %1779 = vmatpush3.msra.mxu0 %v615_v53  ;;  %v629_v45 = vld [vmem:[#allocation6 + $0x290] sm:$0xff]  ;;  %v438_v63 = vrot.slane %v368_v44, 1 }
  0xd5   : > { %1859 = vmatpush3.msra.mxu1 %v647_v54  ;;  %822 = vmatprep.mubr.f32.mxu0 %v2784_v57  ;;  %v661_v53 = vld [vmem:[#allocation6 + $0x390] sm:$0xff] }
  0xd6   : > { %967 = vmatprep.mubr.f32.mxu1 %v2787_v59  ;;  %823 = vmatmul.mubr.f32.gmra.mxu0 %v2756_v8  ;;  %v645_v54 = vld [vmem:[#allocation6 + $0x310] sm:$0xff]  ;;  %v2825_v23 = vsel %vm399_vm0, %v436_v24, %v438_v63  ;;  %v690_v24 = vld [vmem:[#allocation6 + $0x478] sm:$0xff] }
  0xd7   : > { %968 = vmatmul.mubr.f32.gmra.mxu1 %v2790_v56  ;;  %1780 = vmatprep.subr.mxu0 %v630_v6  ;;  %v495_v6 = vrot.slane %v368_v44, 2  ;;  %v627_v44 = vld [vmem:[#allocation6 + $0x280] sm:$0xff] }
  0xd8   : > { %1860 = vmatprep.subr.mxu1 %v662_v11  ;;  %1781 = vmatpush3.msra.mxu0 %v614_v14  ;;  %v628_v11 = vld [vmem:[#allocation6 + $0x288] sm:$0xff] }
  0xd9   : > { %1861 = vmatpush3.msra.mxu1 %v646_v15  ;;  %827 = vmatprep.mubr.f32.mxu0 %v2800_v20  ;;  %v660_v14 = vld [vmem:[#allocation6 + $0x388] sm:$0xff]  ;;  %v2828_v41 = vsel %vm456_vm1, %v493_v43, %v495_v6 }
  0xda   : > { %972 = vmatprep.mubr.f32.mxu1 %v2793_v2  ;;  %828 = vmatmul.mubr.f32.gmra.mxu0 %v2762_v13  ;;  %v612_v15 = vld [vmem:[#allocation6 + $0x208] sm:$0xff] }
  0xdb   : > { %973 = vmatmul.mubr.f32.gmra.mxu1 %v2805_v29  ;;  %1782 = vmatprep.subr.mxu0 %v629_v45  ;;  %v659_v45 = vld [vmem:[#allocation6 + $0x380] sm:$0xff] }
  0xdc   : > { %1862 = vmatprep.subr.mxu1 %v661_v53  ;;  %1783 = vmatpush3.msra.mxu0 %v613_v30  ;;  %v611_v53 = vld [vmem:[#allocation6 + $0x200] sm:$0xff] }
  0xdd   : > { %1863 = vmatpush3.msra.mxu1 %v645_v54  ;;  %832 = vmatprep.mubr.f32.mxu0 %v2815_v42  ;;  %v643_v30 = vld [vmem:[#allocation6 + $0x300] sm:$0xff] }
  0xde   : > { %977 = vmatprep.mubr.f32.mxu1 %v2622_v26  ;;  %833 = vmatmul.mubr.f32.gmra.mxu0 %v2787_v59 }
  0xdf   : > { %978 = vmatmul.mubr.f32.gmra.mxu1 %v2818_v4  ;;  %1784 = vmatprep.subr.mxu0 %v628_v11 }
  0xe0   : > { %1864 = vmatprep.subr.mxu1 %v660_v14  ;;  %1785 = vmatpush3.msra.mxu0 %v612_v15 }
  0xe1   : > { %1865 = vmatpush3.msra.mxu1 %v644_v33  ;;  %837 = vmatprep.mubr.f32.mxu0 %v2825_v23  ;;  %v689_v33 = vld [vmem:[#allocation6 + $0x470] sm:$0xff] }
  0xe2   : > { %982 = vmatprep.mubr.f32.mxu1 %v2637_v35  ;;  %838 = vmatmul.mubr.f32.gmra.mxu0 %v2793_v2 }
  0xe3   : > { %983 = vmatmul.mubr.f32.gmra.mxu1 %v2828_v41  ;;  %1786 = vmatprep.subr.mxu0 %v627_v44 }
  0xe4   : > { %1866 = vmatprep.subr.mxu1 %v659_v45  ;;  %1787 = vmatpush3.msra.mxu0 %v611_v53 }
  0xe5   : > { %1867 = vmatpush3.msra.mxu1 %v643_v30  ;;  %1052 = vmatprep.mubr.f32.mxu0 %v2586_v0  ;;  %v686_v0 = vld [vmem:[#allocation6 + $0x458] sm:$0xff] }
  0xe6   : > { %1197 = vmatprep.mubr.f32.mxu1 %v2610_v18  ;;  %1053 = vmatmul.mubr.f32.vlgmr.msra.gmra.mxu0 %v2580_v61  ;;  %v688_v61 = vld [vmem:[#allocation6 + $0x468] sm:$0xff] }
  0xe7   : > { %1198 = vmatmul.mubr.f32.vlgmr.msra.gmra.mxu1 %v2583_v62  ;;  %1948 = vmatprep.subr.mxu0 %v690_v24  ;;  %v687_v62 = vld [vmem:[#allocation6 + $0x460] sm:$0xff] }
  0xe8   : > { %2004 = vmatprep.subr.mxu1 %v690_v24  ;;  %1949 = vmatpush3.msra.mxu0 %v690_v24 }
  0xe9   : > { %2020 = vmatpush3.msra.mxu1 %v690_v24  ;;  %1057 = vmatprep.mubr.f32.mxu0 %v2600_v10  ;;  %v683_v10 = vld [vmem:[#allocation6 + $0x440] sm:$0xff] }
  0xea   : > { %1202 = vmatprep.mubr.f32.mxu1 %v2631_v31  ;;  %1058 = vmatmul.mubr.f32.gmra.mxu0 %v2595_v7  ;;  %v684_v7 = vld [vmem:[#allocation6 + $0x448] sm:$0xff] }
  0xeb   : > { %1203 = vmatmul.mubr.f32.gmra.mxu1 %v2589_v1  ;;  %1950 = vmatprep.subr.mxu0 %v689_v33  ;;  %v685_v1 = vld [vmem:[#allocation6 + $0x450] sm:$0xff] }
  0xec   : > { %2005 = vmatprep.subr.mxu1 %v689_v33  ;;  %1951 = vmatpush3.msra.mxu0 %v689_v33 }
  0xed   : > { %2021 = vmatpush3.msra.mxu1 %v689_v33  ;;  %1062 = vmatprep.mubr.f32.mxu0 %v2616_v21 }
  0xee   : > { %1207 = vmatprep.mubr.f32.mxu1 %v2660_v49  ;;  %1063 = vmatmul.mubr.f32.gmra.mxu0 %v2610_v18  ;;  %v682_v18 = vld [vmem:[#allocation6 + $0x438] sm:$0xff] }
  0xef   : > { %1208 = vmatmul.mubr.f32.gmra.mxu1 %v2613_v19  ;;  %1952 = vmatprep.subr.mxu0 %v688_v61  ;;  %v681_v19 = vld [vmem:[#allocation6 + $0x430] sm:$0xff] }
  0xf0   : > { %2006 = vmatprep.subr.mxu1 %v688_v61  ;;  %1953 = vmatpush3.msra.mxu0 %v688_v61 }
  0xf1   : > { %2022 = vmatpush3.msra.mxu1 %v688_v61  ;;  %1067 = vmatprep.mubr.f32.mxu0 %v2641_v37 }
  0xf2   : > { %1212 = vmatprep.mubr.f32.mxu1 %v2679_v3  ;;  %1068 = vmatmul.mubr.f32.gmra.mxu0 %v2631_v31  ;;  %v679_v31 = vld [vmem:[#allocation6 + $0x420] sm:$0xff] }
  0xf3   : > { %1213 = vmatmul.mubr.f32.gmra.mxu1 %v2619_v22  ;;  %1954 = vmatprep.subr.mxu0 %v687_v62  ;;  %v680_v22 = vld [vmem:[#allocation6 + $0x428] sm:$0xff] }
  0xf4   : > { %2007 = vmatprep.subr.mxu1 %v687_v62  ;;  %1955 = vmatpush3.msra.mxu0 %v687_v62 }
  0xf5   : > { %2023 = vmatpush3.msra.mxu1 %v687_v62  ;;  %1072 = vmatprep.mubr.f32.mxu0 %v2666_v52 }
  0xf6   : > { %1217 = vmatprep.mubr.f32.mxu1 %v2718_v34  ;;  %1073 = vmatmul.mubr.f32.gmra.mxu0 %v2660_v49  ;;  %v677_v49 = vld [vmem:[#allocation6 + $0x410] sm:$0xff] }
  0xf7   : > { %1218 = vmatmul.mubr.f32.gmra.mxu1 %v2663_v50  ;;  %1956 = vmatprep.subr.mxu0 %v686_v0  ;;  %v676_v50 = vld [vmem:[#allocation6 + $0x408] sm:$0xff] }
  0xf8   : > { %2008 = vmatprep.subr.mxu1 %v686_v0  ;;  %1957 = vmatpush3.msra.mxu0 %v686_v0 }
  0xf9   : > { %2024 = vmatpush3.msra.mxu1 %v686_v0  ;;  %1077 = vmatprep.mubr.f32.mxu0 %v2688_v9 }
  0xfa   : > { %1222 = vmatprep.mubr.f32.mxu1 %v2736_v51  ;;  %1078 = vmatmul.mubr.f32.gmra.mxu0 %v2679_v3 }
  0xfb   : > { %1223 = vmatmul.mubr.f32.gmra.mxu1 %v2649_v46  ;;  %1958 = vmatprep.subr.mxu0 %v685_v1  ;;  %v678_v46 = vld [vmem:[#allocation6 + $0x418] sm:$0xff] }
  0xfc   : > { %2009 = vmatprep.subr.mxu1 %v685_v1  ;;  %1959 = vmatpush3.msra.mxu0 %v685_v1 }
  0xfd   : > { %2025 = vmatpush3.msra.mxu1 %v685_v1  ;;  %1082 = vmatprep.mubr.f32.mxu0 %v2726_v39 }
  0xfe   : > { %1227 = vmatprep.mubr.f32.mxu1 %v2753_v58  ;;  %1083 = vmatmul.mubr.f32.gmra.mxu0 %v2718_v34 }
  0xff   : > { %1228 = vmatmul.mubr.f32.gmra.mxu1 %v2721_v36  ;;  %1960 = vmatprep.subr.mxu0 %v684_v7 }
 0x100   : > { %2010 = vmatprep.subr.mxu1 %v684_v7  ;;  %1961 = vmatpush3.msra.mxu0 %v684_v7 }
 0x101   : > { %2026 = vmatpush3.msra.mxu1 %v684_v7  ;;  %1087 = vmatprep.mubr.f32.mxu0 %v2743_v55 }
 0x102   : > { %1232 = vmatprep.mubr.f32.mxu1 %v2769_v25  ;;  %1088 = vmatmul.mubr.f32.gmra.mxu0 %v2736_v51 }
 0x103   : > { %1233 = vmatmul.mubr.f32.gmra.mxu1 %v2729_v40  ;;  %1962 = vmatprep.subr.mxu0 %v683_v10 }
 0x104   : > { %2011 = vmatprep.subr.mxu1 %v683_v10  ;;  %1963 = vmatpush3.msra.mxu0 %v683_v10 }
 0x105   : > { %2027 = vmatpush3.msra.mxu1 %v683_v10  ;;  %1092 = vmatprep.mubr.f32.mxu0 %v2759_v12 }
 0x106   : > { %1237 = vmatprep.mubr.f32.mxu1 %v2784_v57  ;;  %1093 = vmatmul.mubr.f32.gmra.mxu0 %v2753_v58 }
 0x107   : > { %1238 = vmatmul.mubr.f32.gmra.mxu1 %v2756_v8  ;;  %1964 = vmatprep.subr.mxu0 %v682_v18 }
 0x108   : > { %2012 = vmatprep.subr.mxu1 %v682_v18  ;;  %1965 = vmatpush3.msra.mxu0 %v682_v18 }
 0x109   : > { %2028 = vmatpush3.msra.mxu1 %v682_v18  ;;  %1097 = vmatprep.mubr.f32.mxu0 %v2774_v38 }
 0x10a   : > { %1242 = vmatprep.mubr.f32.mxu1 %v2800_v20  ;;  %1098 = vmatmul.mubr.f32.gmra.mxu0 %v2769_v25 }
 0x10b   : > { %1243 = vmatmul.mubr.f32.gmra.mxu1 %v2762_v13  ;;  %1966 = vmatprep.subr.mxu0 %v681_v19 }
 0x10c   : > { %2013 = vmatprep.subr.mxu1 %v681_v19  ;;  %1967 = vmatpush3.msra.mxu0 %v681_v19 }
 0x10d   : > { %2029 = vmatpush3.msra.mxu1 %v681_v19  ;;  %1102 = vmatprep.mubr.f32.mxu0 %v2790_v56 }
 0x10e   : > { %1247 = vmatprep.mubr.f32.mxu1 %v2815_v42  ;;  %1103 = vmatmul.mubr.f32.gmra.mxu0 %v2784_v57 }
 0x10f   : > { %1248 = vmatmul.mubr.f32.gmra.mxu1 %v2787_v59  ;;  %1968 = vmatprep.subr.mxu0 %v680_v22 }
 0x110   : > { %2014 = vmatprep.subr.mxu1 %v680_v22  ;;  %1969 = vmatpush3.msra.mxu0 %v680_v22 }
 0x111   : > { %2030 = vmatpush3.msra.mxu1 %v680_v22  ;;  %1107 = vmatprep.mubr.f32.mxu0 %v2805_v29 }
 0x112   : > { %1252 = vmatprep.mubr.f32.mxu1 %v2825_v23  ;;  %1108 = vmatmul.mubr.f32.gmra.mxu0 %v2800_v20 }
 0x113   : > { %1253 = vmatmul.mubr.f32.gmra.mxu1 %v2793_v2  ;;  %1970 = vmatprep.subr.mxu0 %v679_v31 }
 0x114   : > { %2015 = vmatprep.subr.mxu1 %v679_v31  ;;  %1971 = vmatpush3.msra.mxu0 %v679_v31 }
 0x115   : > { %2031 = vmatpush3.msra.mxu1 %v679_v31  ;;  %1112 = vmatprep.mubr.f32.mxu0 %v2818_v4 }
 0x116   : > { %1257 = vmatprep.mubr.f32.mxu1 %v2652_v47  ;;  %1113 = vmatmul.mubr.f32.gmra.mxu0 %v2815_v42 }
 0x117   : > { %1258 = vmatmul.mubr.f32.gmra.mxu1 %v2622_v26  ;;  %1972 = vmatprep.subr.mxu0 %v678_v46  ;;  %v675_v26 = vld [vmem:[#allocation6 + $0x400] sm:$0xff] }
 0x118   : > { %2016 = vmatprep.subr.mxu1 %v678_v46  ;;  %1973 = vmatpush3.msra.mxu0 %v678_v46 }
 0x119   : > { %2032 = vmatpush3.msra.mxu1 %v678_v46  ;;  %1117 = vmatprep.mubr.f32.mxu0 %v2828_v41 }
 0x11a   : > { %1262 = vmatprep.mubr.f32.mxu1 %v2696_v16  ;;  %1118 = vmatmul.mubr.f32.gmra.mxu0 %v2825_v23 }
 0x11b   : > { %1263 = vmatmul.mubr.f32.gmra.mxu1 %v2637_v35  ;;  %1974 = vmatprep.subr.mxu0 %v677_v49 }
 0x11c   : > { %2017 = vmatprep.subr.mxu1 %v677_v49  ;;  %1975 = vmatpush3.msra.mxu0 %v677_v49 }
 0x11d   : > { %2033 = vmatpush3.msra.mxu1 %v677_v49  ;;  %1122 = vmatprep.mubr.f32.mxu0 %v2655_v48 }
 0x11e   : > { %1267 = vmatprep.mubr.f32.mxu1 %v2702_v27  ;;  %1123 = vmatmul.mubr.f32.gmra.mxu0 %v2652_v47  ;;  %v2917_v47 = vld [vmem:[%s3154_s2] ss:$0 sm:$0xff] }
 0x11f   : > { %1268 = vmatmul.mubr.f32.gmra.mxu1 %v2674_v60  ;;  %1976 = vmatprep.subr.mxu0 %v676_v50 }
 0x120   : > { %2018 = vmatprep.subr.mxu1 %v676_v50  ;;  %1977 = vmatpush3.msra.mxu0 %v676_v50 }
 0x121   : > { %2034 = vmatpush3.msra.mxu1 %v676_v50  ;;  %1127 = vmatprep.mubr.f32.mxu0 %v2699_v17 }
 0x122   : > { %1272 = vmatprep.mubr.f32.mxu1 %v2710_v32  ;;  %1128 = vmatmul.mubr.f32.gmra.mxu0 %v2696_v16 }
 0x123   : > { %1273 = vmatmul.mubr.f32.gmra.mxu1 %v2682_v5  ;;  %1978 = vmatprep.subr.mxu0 %v675_v26 }
 0x124   : > { %2019 = vmatprep.subr.mxu1 %v675_v26  ;;  %1979 = vmatpush3.msra.mxu0 %v675_v26 }
 0x125   : > { %2035 = vmatpush3.msra.mxu1 %v675_v26  ;;  %1980 = vmatprep.mubr.f32.mxu0 %v2616_v21  ;;  %v3183_v21 = vld [vmem:[#allocation17_spill] sm:$0xff] }
 0x126   : > { %1992 = vmatprep.mubr.f32.mxu1 %v2790_v56  ;;  %1981 = vmatmul.mubr.f32.vlgmr.msra.gmra.mxu0 %v2641_v37 }
 0x127   : > { %1993 = vmatmul.mubr.f32.vlgmr.msra.gmra.mxu1 %v2805_v29  ;;  %1983 = vmatprep.mubr.f32.mxu0 %v2666_v52 }
 0x128   : > { %1995 = vmatprep.mubr.f32.mxu1 %v2818_v4 }
 0x12a   : > { %1984 = vmatmul.mubr.f32.gmra.mxu0 %v2688_v9 }
 0x12b   : > { %1996 = vmatmul.mubr.f32.gmra.mxu1 %v2828_v41  ;;  %1986 = vmatprep.mubr.f32.mxu0 %v2726_v39 }
 0x12c   : > { %1998 = vmatprep.mubr.f32.mxu1 %v2655_v48 }
 0x12e   : > { %1987 = vmatmul.mubr.f32.gmra.mxu0 %v2743_v55 }
 0x12f   : > { %1999 = vmatmul.mubr.f32.gmra.mxu1 %v2699_v17  ;;  %1989 = vmatprep.mubr.f32.mxu0 %v2759_v12 }
 0x130   : > { %2001 = vmatprep.mubr.f32.mxu1 %v2705_v28 }
 0x132   : > { %1990 = vmatmul.mubr.f32.gmra.mxu0 %v2774_v38 }
 0x133   : > { %2002 = vmatmul.mubr.f32.gmra.mxu1 %v3183_v21 }
 0x166   : > { %v1628_v35 = vpop.f32.mrf.mxu0 }
 0x167   : > { %v1708_v37 = vpop.f32.mrf.mxu1 }
 0x168   : > { %v1629_v48 = vpop.f32.mrf.mxu0 }
 0x169   : > { %v1709_v52 = vpop.f32.mrf.mxu1  ;;  %v1630_v60 = vadd.f32 %v1629_v48, %v1628_v35 }
 0x16a   : > { %v1710_v3 = vadd.f32 %v1709_v52, %v1708_v37  ;;  %v1631_v5 = vpop.f32.mrf.mxu0 }
 0x16b   : > { %v1711_v9 = vpop.f32.mrf.mxu1  ;;  %v765_v16 = vadd.f32 %v1630_v60, %v2917_v47 }
 0x16c   : > { %v1632_v17 = vpop.f32.mrf.mxu0 }
 0x16d   : > { %v1712_v27 = vpop.f32.mrf.mxu1  ;;  %v2920_v28 = vadd.f32 %v1710_v3, %v765_v16  ;;  %v1633_v32 = vadd.f32 %v1632_v17, %v1631_v5 }
 0x16e   : > { %v1713_v34 = vadd.f32 %v1712_v27, %v1711_v9  ;;  %v1634_v36 = vpop.f32.mrf.mxu0 }
 0x16f   : > { %v1714_v39 = vpop.f32.mrf.mxu1  ;;  %v770_v40 = vadd.f32 %v1633_v32, %v2917_v47 }
 0x170   : > { %v1635_v51 = vpop.f32.mrf.mxu0 }
 0x171   : > { %v1715_v55 = vpop.f32.mrf.mxu1  ;;  %v2923_v58 = vadd.f32 %v1713_v34, %v770_v40  ;;  %v1636_v8 = vadd.f32 %v1635_v51, %v1634_v36 }
 0x172   : > { %v1716_v12 = vadd.f32 %v1715_v55, %v1714_v39  ;;  %v1637_v13 = vpop.f32.mrf.mxu0 }
 0x173   : > { %v1717_v25 = vpop.f32.mrf.mxu1  ;;  %v775_v38 = vadd.f32 %v1636_v8, %v2917_v47 }
 0x174   : > { %v1638_v57 = vpop.f32.mrf.mxu0 }
 0x175   : > { %v1718_v59 = vpop.f32.mrf.mxu1  ;;  %v2926_v56 = vadd.f32 %v1716_v12, %v775_v38  ;;  %v1639_v2 = vadd.f32 %v1638_v57, %v1637_v13 }
 0x176   : > { %v1719_v20 = vadd.f32 %v1718_v59, %v1717_v25  ;;  %v1640_v29 = vpop.f32.mrf.mxu0 }
 0x177   : > { %v1720_v43 = vpop.f32.mrf.mxu1  ;;  %v780_v54 = vadd.f32 %v1639_v2, %v2917_v47 }
 0x178   : > { %v1641_v42 = vpop.f32.mrf.mxu0 }
 0x179   : > { %v1721_v63 = vpop.f32.mrf.mxu1  ;;  %v2929_v4 = vadd.f32 %v1719_v20, %v780_v54  ;;  %v1642_v6 = vadd.f32 %v1641_v42, %v1640_v29 }
 0x17a   : > { %v1722_v11 = vadd.f32 %v1721_v63, %v1720_v43  ;;  %v1643_v14 = vpop.f32.mrf.mxu0 }
 0x17b   : > { %v1723_v15 = vpop.f32.mrf.mxu1  ;;  %v785_v23 = vadd.f32 %v1642_v6, %v2917_v47 }
 0x17c   : > { %v1644_v41 = vpop.f32.mrf.mxu0 }
 0x17d   : > { %v1724_v44 = vpop.f32.mrf.mxu1  ;;  %v2932_v45 = vadd.f32 %v1722_v11, %v785_v23  ;;  %v1645_v53 = vadd.f32 %v1644_v41, %v1643_v14 }
 0x17e   : > { %v1725_v30 = vadd.f32 %v1724_v44, %v1723_v15  ;;  %v1646_v24 = vpop.f32.mrf.mxu0 }
 0x17f   : > { %v1726_v33 = vpop.f32.mrf.mxu1  ;;  %v790_v61 = vadd.f32 %v1645_v53, %v2917_v47 }
 0x180   : > { %v1647_v62 = vpop.f32.mrf.mxu0 }
 0x181   : > { %v1727_v0 = vpop.f32.mrf.mxu1  ;;  %v2935_v1 = vadd.f32 %v1725_v30, %v790_v61  ;;  %v1648_v7 = vadd.f32 %v1647_v62, %v1646_v24 }
 0x182   : > { %v1728_v10 = vadd.f32 %v1727_v0, %v1726_v33  ;;  %v1649_v18 = vpop.f32.mrf.mxu0 }
 0x183   : > { %v1729_v19 = vpop.f32.mrf.mxu1  ;;  %v795_v22 = vadd.f32 %v1648_v7, %v2917_v47 }
 0x184   : > { %v1650_v31 = vpop.f32.mrf.mxu0 }
 0x185   : > { %v1730_v46 = vpop.f32.mrf.mxu1  ;;  %v2938_v49 = vadd.f32 %v1728_v10, %v795_v22  ;;  %v1651_v50 = vadd.f32 %v1650_v31, %v1649_v18 }
 0x186   : > { %v1731_v26 = vadd.f32 %v1730_v46, %v1729_v19  ;;  %v1652_v21 = vpop.f32.mrf.mxu0 }
 0x187   : > { %3184 = vst [vmem:[#allocation17_spill] sm:$0xff] %v2938_v49  ;;  %v1732_v35 = vpop.f32.mrf.mxu1  ;;  %v800_v37 = vadd.f32 %v1651_v50, %v2917_v47 }
 0x188   : > { %v1653_v48 = vpop.f32.mrf.mxu0 }
 0x189   : > { %v1733_v52 = vpop.f32.mrf.mxu1  ;;  %v2941_v60 = vadd.f32 %v1731_v26, %v800_v37  ;;  %v1654_v3 = vadd.f32 %v1653_v48, %v1652_v21 }
 0x18a   : > { %v1734_v5 = vadd.f32 %v1733_v52, %v1732_v35  ;;  %v1655_v9 = vpop.f32.mrf.mxu0 }
 0x18b   : > { %3185 = vst [vmem:[#allocation18_spill] sm:$0xff] %v2941_v60  ;;  %v1735_v16 = vpop.f32.mrf.mxu1  ;;  %v805_v17 = vadd.f32 %v1654_v3, %v2917_v47 }
 0x18c   : > { %v1656_v27 = vpop.f32.mrf.mxu0 }
 0x18d   : > { %v1736_v32 = vpop.f32.mrf.mxu1  ;;  %v2944_v34 = vadd.f32 %v1734_v5, %v805_v17  ;;  %v1657_v36 = vadd.f32 %v1656_v27, %v1655_v9 }
 0x18e   : > { %v1737_v39 = vadd.f32 %v1736_v32, %v1735_v16  ;;  %v1658_v40 = vpop.f32.mrf.mxu0 }
 0x18f   : > { %v1738_v51 = vpop.f32.mrf.mxu1  ;;  %v810_v55 = vadd.f32 %v1657_v36, %v2917_v47 }
 0x190   : > { %v1659_v8 = vpop.f32.mrf.mxu0 }
 0x191   : > { %v1739_v12 = vpop.f32.mrf.mxu1  ;;  %v2947_v13 = vadd.f32 %v1737_v39, %v810_v55  ;;  %v1660_v25 = vadd.f32 %v1659_v8, %v1658_v40 }
 0x192   : > { %v1740_v38 = vadd.f32 %v1739_v12, %v1738_v51  ;;  %v1661_v57 = vpop.f32.mrf.mxu0 }
 0x193   : > { %v1741_v59 = vpop.f32.mrf.mxu1  ;;  %v815_v2 = vadd.f32 %v1660_v25, %v2917_v47 }
 0x194   : > { %v1662_v20 = vpop.f32.mrf.mxu0 }
 0x195   : > { %v1742_v29 = vpop.f32.mrf.mxu1  ;;  %v2950_v43 = vadd.f32 %v1740_v38, %v815_v2  ;;  %v1663_v54 = vadd.f32 %v1662_v20, %v1661_v57 }
 0x196   : > { %v1743_v42 = vadd.f32 %v1742_v29, %v1741_v59  ;;  %v1664_v63 = vpop.f32.mrf.mxu0 }
 0x197   : > { %3186 = vst [vmem:[#allocation19_spill] sm:$0xff] %v2950_v43  ;;  %v1744_v6 = vpop.f32.mrf.mxu1  ;;  %v820_v11 = vadd.f32 %v1663_v54, %v2917_v47 }
 0x198   : > { %v1665_v14 = vpop.f32.mrf.mxu0 }
 0x199   : > { %v1745_v15 = vpop.f32.mrf.mxu1  ;;  %v2953_v23 = vadd.f32 %v1743_v42, %v820_v11  ;;  %v1666_v41 = vadd.f32 %v1665_v14, %v1664_v63 }
 0x19a   : > { %v1746_v44 = vadd.f32 %v1745_v15, %v1744_v6  ;;  %v1667_v53 = vpop.f32.mrf.mxu0 }
 0x19b   : > { %3187 = vst [vmem:[#allocation20_spill] sm:$0xff] %v2953_v23  ;;  %v1747_v30 = vpop.f32.mrf.mxu1  ;;  %v825_v24 = vadd.f32 %v1666_v41, %v2917_v47 }
 0x19c   : > { %v1668_v33 = vpop.f32.mrf.mxu0 }
 0x19d   : > { %v1748_v61 = vpop.f32.mrf.mxu1  ;;  %v2956_v62 = vadd.f32 %v1746_v44, %v825_v24  ;;  %v1669_v0 = vadd.f32 %v1668_v33, %v1667_v53 }
 0x19e   : > { %v1749_v7 = vadd.f32 %v1748_v61, %v1747_v30  ;;  %v1670_v10 = vpop.f32.mrf.mxu0 }
 0x19f   : > { %3188 = vst [vmem:[#allocation21_spill] sm:$0xff] %v2956_v62  ;;  %v1750_v18 = vpop.f32.mrf.mxu1  ;;  %v830_v19 = vadd.f32 %v1669_v0, %v2917_v47 }
 0x1a0   : > { %v1671_v22 = vpop.f32.mrf.mxu0 }
 0x1a1   : > { %v1751_v31 = vpop.f32.mrf.mxu1  ;;  %v2959_v46 = vadd.f32 %v1749_v7, %v830_v19  ;;  %v1672_v50 = vadd.f32 %v1671_v22, %v1670_v10 }
 0x1a2   : > { %v1752_v26 = vadd.f32 %v1751_v31, %v1750_v18  ;;  %v1673_v21 = vpop.f32.mrf.mxu0 }
 0x1a3   : > { %3189 = vst [vmem:[#allocation22_spill] sm:$0xff] %v2959_v46  ;;  %v1753_v35 = vpop.f32.mrf.mxu1  ;;  %v835_v37 = vadd.f32 %v1672_v50, %v2917_v47 }
 0x1a4   : > { %v1674_v48 = vpop.f32.mrf.mxu0 }
 0x1a5   : > { %v1754_v52 = vpop.f32.mrf.mxu1  ;;  %v2962_v3 = vadd.f32 %v1752_v26, %v835_v37  ;;  %v1675_v5 = vadd.f32 %v1674_v48, %v1673_v21 }
 0x1a6   : > { %v1755_v9 = vadd.f32 %v1754_v52, %v1753_v35  ;;  %v1788_v16 = vpop.f32.mrf.mxu0 }
 0x1a7   : > { %3190 = vst [vmem:[#allocation23_spill] sm:$0xff] %v2962_v3  ;;  %v2964_v17 = vpop.f32.mrf.mxu1  ;;  %v840_v27 = vadd.f32 %v1675_v5, %v2917_v47 }
 0x1a8   : > { %v1789_v32 = vpop.f32.mrf.mxu0 }
 0x1a9   : > { %v1869_v36 = vpop.f32.mrf.mxu1  ;;  %v2967_v39 = vadd.f32 %v1755_v9, %v840_v27  ;;  %v1790_v3 = vadd.f32 %v1789_v32, %v1788_v16 }
 0x1aa   : > { %v1791_v40 = vpop.f32.mrf.mxu0  ;;  %v1870_v23 = vadd.f32 %v1869_v36, %v2964_v17 }
 0x1ab   : > { %3191 = vst [vmem:[#allocation24_spill] sm:$0xff] %v2967_v39  ;;  %v2969_v51 = vpop.f32.mrf.mxu1  ;;  %v1055_v46 = vadd.f32 %v1790_v3, %v2920_v28 }
 0x1ac   : > { %v1792_v55 = vpop.f32.mrf.mxu0 }
 0x1ad   : > { %v1872_v8 = vpop.f32.mrf.mxu1  ;;  %v1793_v39 = vadd.f32 %v1792_v55, %v1791_v40 }
 0x1ae   : > { %v1794_v12 = vpop.f32.mrf.mxu0  ;;  %v1873_v40 = vadd.f32 %v1872_v8, %v2969_v51 }
 0x1af   : > { %v2971_v25 = vpop.f32.mrf.mxu1  ;;  %v1060_v16 = vadd.f32 %v1793_v39, %v2923_v58 }
 0x1b0   : > { %v1795_v38 = vpop.f32.mrf.mxu0 }
 0x1b1   : > { %v2973_v57 = vpop.f32.mrf.mxu1 }
 0x1b2   : > { %v1797_v59 = vpop.f32.mrf.mxu0  ;;  %v1876_v17 = vadd.f32 %v2973_v57, %v2971_v25 }
 0x1b3   : > { %v2975_v2 = vpop.f32.mrf.mxu1 }
 0x1b4   : > { %v1798_v20 = vpop.f32.mrf.mxu0 }
 0x1b5   : > { %v2977_v47 = vpop.f32.mrf.mxu1 }
 0x1b6   : > { %v1800_v29 = vpop.f32.mrf.mxu0  ;;  %v1879_v51 = vadd.f32 %v2977_v47, %v2975_v2 }
 0x1b7   : > { %v2979_v54 = vpop.f32.mrf.mxu1 }
 0x1b8   : > { %v1801_v42 = vpop.f32.mrf.mxu0 }
 0x1b9   : > { %v2981_v63 = vpop.f32.mrf.mxu1  ;;  %v1802_v43 = vadd.f32 %v1801_v42, %v1800_v29  ;;  %v1205_v29 = vadd.f32 %v1873_v40, %v1060_v16  ;;  %v3212_v40 = vld [vmem:[#allocation21_spill] sm:$0xff] }
 0x1ba   : > { %v1803_v6 = vpop.f32.mrf.mxu0 }
 0x1bb   : > { %v2983_v11 = vpop.f32.mrf.mxu1  ;;  %v1075_v58 = vadd.f32 %v1802_v43, %v2932_v45 }
 0x1bc   : > { %v1804_v14 = vpop.f32.mrf.mxu0 }
 0x1bd   : > { %v2985_v15 = vpop.f32.mrf.mxu1  ;;  %v1805_v49 = vadd.f32 %v1804_v14, %v1803_v6 }
 0x1be   : > { %v1806_v41 = vpop.f32.mrf.mxu0 }
 0x1bf   : > { %v2987_v44 = vpop.f32.mrf.mxu1  ;;  %v1080_v36 = vadd.f32 %v1805_v49, %v2935_v1  ;;  %v3203_v49 = vld [vmem:[#allocation20_spill] sm:$0xff] }
 0x1c0   : > { %3192 = vst [vmem:[#allocation25_spill] sm:$0xff] %v2987_v44  ;;  %v1807_v53 = vpop.f32.mrf.mxu0 }
 0x1c1   : > { %v2989_v30 = vpop.f32.mrf.mxu1 }
 0x1c2   : > { %3193 = vst [vmem:[#allocation26_spill] sm:$0xff] %v2989_v30  ;;  %v2991_v24 = vpop.f32.mrf.mxu0 }
 0x1c3   : > { %3194 = vst [vmem:[#allocation27_spill] sm:$0xff] %v2991_v24  ;;  %v2993_v33 = vpop.f32.mrf.mxu1 }
 0x1c4   : > { %3195 = vst [vmem:[#allocation28_spill] sm:$0xff] %v2993_v33  ;;  %v2995_v61 = vpop.f32.mrf.mxu0 }
 0x1c5   : > { %3196 = vst [vmem:[#allocation29_spill] sm:$0xff] %v2995_v61  ;;  %v2997_v0 = vpop.f32.mrf.mxu1  ;;  %v1799_v61 = vadd.f32 %v1798_v20, %v1797_v59  ;;  %v1200_v59 = vadd.f32 %v1870_v23, %v1055_v46  ;;  %v1882_v23 = vadd.f32 %v2981_v63, %v2979_v54  ;;  %v1885_v46 = vadd.f32 %v2985_v15, %v2983_v11  ;;  %v3205_v54 = vld [vmem:[#allocation17_spill] sm:$0xff]  ;;  %v3206_v11 = vld [vmem:[#allocation19_spill] sm:$0xff] }
 0x1c6   : > { %3197 = vst [vmem:[#allocation30_spill] sm:$0xff] %v2997_v0  ;;  %v1812_v7 = vpop.f32.mrf.mxu0 }
 0x1c7   : > { %v2999_v10 = vpop.f32.mrf.mxu1  ;;  %v1070_v28 = vadd.f32 %v1799_v61, %v2929_v4 }
 0x1c8   : > { %3198 = vst [vmem:[#allocation31_spill] sm:$0xff] %v2999_v10  ;;  %v1813_v18 = vpop.f32.mrf.mxu0 }
 0x1c9   : > { %v1893_v19 = vpop.f32.mrf.mxu1  ;;  %v1814_v55 = vadd.f32 %v1813_v18, %v1812_v7  ;;  %v1215_v2 = vadd.f32 %v1879_v51, %v1070_v28 }
 0x1ca   : > { %v1815_v22 = vpop.f32.mrf.mxu0 }
 0x1cb   : > { %v1895_v31 = vpop.f32.mrf.mxu1  ;;  %v1095_v45 = vadd.f32 %v1814_v55, %v2944_v34 }
 0x1cc   : > { %v1816_v50 = vpop.f32.mrf.mxu0  ;;  %v3208_v18 = vld [vmem:[#allocation29_spill] sm:$0xff] }
 0x1cd   : > { %v1896_v26 = vpop.f32.mrf.mxu1  ;;  %v1817_v10 = vadd.f32 %v1816_v50, %v1815_v22 }
 0x1ce   : > { %v1818_v21 = vpop.f32.mrf.mxu0  ;;  %v1897_v1 = vadd.f32 %v1896_v26, %v1895_v31 }
 0x1cf   : > { %v3001_v35 = vpop.f32.mrf.mxu1  ;;  %v1100_v39 = vadd.f32 %v1817_v10, %v2947_v13  ;;  %v3204_v42 = vld [vmem:[#allocation31_spill] sm:$0xff] }
 0x1d0   : > { %3199 = vst [vmem:[#allocation32_spill] sm:$0xff] %v3001_v35  ;;  %v1819_v37 = vpop.f32.mrf.mxu0  ;;  %v1796_v35 = vadd.f32 %v1795_v38, %v1794_v12  ;;  %v1894_v6 = vadd.f32 %v1893_v19, %v3204_v42 }
 0x1d1   : > { %v3003_v48 = vpop.f32.mrf.mxu1  ;;  %v1820_v8 = vadd.f32 %v1819_v37, %v1818_v21  ;;  %v1245_v14 = vadd.f32 %v1897_v1, %v1100_v39 }
 0x1d2   : > { %3200 = vst [vmem:[#allocation33_spill] sm:$0xff] %v3003_v48  ;;  %v1821_v52 = vpop.f32.mrf.mxu0  ;;  %v1240_v50 = vadd.f32 %v1894_v6, %v1095_v45  ;;  %v3219_v6 = vld [vmem:[#allocation23_spill] sm:$0xff] }
 0x1d3   : > { %v1901_v5 = vpop.f32.mrf.mxu1  ;;  %v1105_v15 = vadd.f32 %v1820_v8, %v3206_v11 }
 0x1d4   : > { %v1822_v9 = vpop.f32.mrf.mxu0 }
 0x1d5   : > { %v1902_v27 = vpop.f32.mrf.mxu1  ;;  %v1823_v3 = vadd.f32 %v1822_v9, %v1821_v52 }
 0x1d6   : > { %v1824_v30 = vpop.f32.mrf.mxu0  ;;  %v1903_v34 = vadd.f32 %v1902_v27, %v1901_v5 }
 0x1d7   : > { %v3005_v44 = vpop.f32.mrf.mxu1  ;;  %v1110_v13 = vadd.f32 %v1823_v3, %v3203_v49  ;;  %v3209_v19 = vld [vmem:[#allocation32_spill] sm:$0xff] }
 0x1d8   : > { %3201 = vst [vmem:[#allocation34_spill] sm:$0xff] %v3005_v44  ;;  %v1825_v0 = vpop.f32.mrf.mxu0 }
 0x1d9   : > { %v3007_v33 = vpop.f32.mrf.mxu1  ;;  %v1826_v61 = vadd.f32 %v1825_v0, %v1824_v30  ;;  %v3210_v26 = vld [vmem:[#allocation33_spill] sm:$0xff]  ;;  %v1255_v5 = vadd.f32 %v1903_v34, %v1110_v13 }
 0x1da   : > { %3202 = vst [vmem:[#allocation35_spill] sm:$0xff] %v3007_v33  ;;  %v1827_v60 = vpop.f32.mrf.mxu0  ;;  %v1065_v33 = vadd.f32 %v1796_v35, %v2926_v56  ;;  %v1808_v56 = vadd.f32 %v1807_v53, %v1806_v41  ;;  %v1225_v41 = vadd.f32 %v1885_v46, %v1080_v36  ;;  %v3037_v53 = vadd.f32 %v1882_v23, %v1075_v58  ;;  %v3211_v35 = vld [vmem:[#allocation22_spill] sm:$0xff] }
 0x1db   : > { %v3009_v62 = vpop.f32.mrf.mxu1  ;;  %v1900_v21 = vadd.f32 %v3210_v26, %v3209_v19  ;;  %v1115_v55 = vadd.f32 %v1826_v61, %v3212_v40 }
 0x1dc   : > { %v1828_v48 = vpop.f32.mrf.mxu0  ;;  %v1210_v47 = vadd.f32 %v1876_v17, %v1065_v33  ;;  %v3040_v63 = vadd.f32 %v1808_v56, %v3205_v54 }
 0x1dd   : > { %v1908_v24 = vpop.f32.mrf.mxu1  ;;  %v1829_v43 = vadd.f32 %v1828_v48, %v1827_v60  ;;  %v3207_v60 = vld [vmem:[#allocation27_spill] sm:$0xff]  ;;  %v1250_v36 = vadd.f32 %v1900_v21, %v1105_v15 }
 0x1de   : > { %v1830_v32 = vpop.f32.mrf.mxu0  ;;  %v1811_v22 = vadd.f32 %v3208_v18, %v3207_v60  ;;  %v1909_v28 = vadd.f32 %v1908_v24, %v3009_v62  ;;  %v3216_v62 = vld [vmem:[#allocation24_spill] sm:$0xff]  ;;  %v3220_v60 = vld [vmem:[#allocation25_spill] sm:$0xff]  ;;  %v3221_v18 = vld [vmem:[#allocation26_spill] sm:$0xff] }
 0x1df   : > { %v3014_v44 = vpop.f32.mrf.mxu1  ;;  %v1120_v37 = vadd.f32 %v1829_v43, %v3211_v35 }
 0x1e0   : > { %v1831_v12 = vpop.f32.mrf.mxu0 }
 0x1e1   : > { %v3019_v38 = vpop.f32.mrf.mxu1  ;;  %v1832_v3 = vadd.f32 %v1831_v12, %v1830_v32  ;;  %v3215_v23 = vld [vmem:[#allocation35_spill] sm:$0xff]  ;;  %v1265_v45 = vadd.f32 %v1909_v28, %v1120_v37 }
 0x1e2   : > { %v1833_v4 = vpop.f32.mrf.mxu0 }
 0x1e3   : > { %v3028_v20 = vpop.f32.mrf.mxu1 }
 0x1e4   : > { %v1834_v25 = vpop.f32.mrf.mxu0 }
 0x1e5   : > { %v1914_v57 = vpop.f32.mrf.mxu1  ;;  %v1835_v48 = vadd.f32 %v1834_v25, %v1833_v4  ;;  %v3217_v25 = vld [vmem:[#allocation28_spill] sm:$0xff] }
 0x1e6   : > { %v1982_v7 = vpop.f32.mrf.mxu0  ;;  %v1915_v54 = vadd.f32 %v1914_v57, %v3028_v20 }
 0x1e7   : > { %v1994_v10 = vpop.f32.mrf.mxu1  ;;  %v1350_v31 = vadd.f32 %v1982_v7, %v1205_v29  ;;  %v3214_v29 = vld [vmem:[#allocation34_spill] sm:$0xff]  ;;  %v1130_v24 = vadd.f32 %v1835_v48, %v3216_v62 }
 0x1e8   : > { %v1390_v33 = vadd.f32 %v1994_v10, %v1245_v14  ;;  %v1344_v52 = vpop.f32.mrf.mxu0  ;;  %v1906_v46 = vadd.f32 %v3215_v23, %v3214_v29  ;;  %v1125_v14 = vadd.f32 %v1832_v3, %v3219_v6 }
 0x1e9   : > { %v1384_v9 = vpop.f32.mrf.mxu1  ;;  %v1424_v30 = vmax.f32 %v1350_v31, 0.0  ;;  %v1345_v27 = vadd.f32 %v1344_v52, %v1200_v59  ;;  %v3213_v59 = vld [vmem:[#allocation18_spill] sm:$0xff]  ;;  %v1912_v31 = vadd.f32 %v3019_v38, %v3014_v44 }
 0x1ea   : > { %v1432_v0 = vmax.f32 %v1390_v33, 0.0  ;;  %v1385_v16 = vadd.f32 %v1384_v9, %v1240_v50  ;;  %v1985_v17 = vpop.f32.mrf.mxu0  ;;  %v1090_v4 = vadd.f32 %v1811_v22, %v3213_v59  ;;  %v1260_v34 = vadd.f32 %v1906_v46, %v1115_v55 }
 0x1eb   : > { %v1997_v58 = vpop.f32.mrf.mxu1  ;;  %1440 = vst [vmem:[%s2521_s30 + $0x8] sm:$0xff] %v1424_v30  ;;  %v1423_v39 = vmax.f32 %v1345_v27, 0.0  ;;  %v1360_v56 = vadd.f32 %v1985_v17, %v1215_v2  ;;  %v3218_v2 = vld [vmem:[#allocation30_spill] sm:$0xff]  ;;  %v1888_v22 = vadd.f32 %v3221_v18, %v3220_v60  ;;  %v1275_v50 = vadd.f32 %v1915_v54, %v1130_v24 }
 0x1ec   : > { %1448 = vst [vmem:[%s2521_s30 + $0x48] sm:$0xff] %v1432_v0  ;;  %v1431_v51 = vmax.f32 %v1385_v16, 0.0  ;;  %v1400_v8 = vadd.f32 %v1997_v58, %v1255_v5  ;;  %v1354_v32 = vpop.f32.mrf.mxu0  ;;  %v1891_v42 = vadd.f32 %v3218_v2, %v3217_v25  ;;  %v1270_v38 = vadd.f32 %v1912_v31, %v1125_v14 }
 0x1ed   : > { %v1394_v12 = vpop.f32.mrf.mxu1  ;;  %1439 = vst [vmem:[%s2521_s30] sm:$0xff] %v1423_v39  ;;  %v1426_v1 = vmax.f32 %v1360_v56, 0.0  ;;  %v1355_v13 = vadd.f32 %v1354_v32, %v1210_v47  ;;  %v1230_v44 = vadd.f32 %v1888_v22, %v3040_v63 }
 0x1ee   : > { %1447 = vst [vmem:[%s2521_s30 + $0x40] sm:$0xff] %v1431_v51  ;;  %v1434_v49 = vmax.f32 %v1400_v8, 0.0  ;;  %v1395_v43 = vadd.f32 %v1394_v12, %v1250_v36  ;;  %v1988_v11 = vpop.f32.mrf.mxu0  ;;  %v1235_v57 = vadd.f32 %v1891_v42, %v1090_v4 }
 0x1ef   : > { %v2000_v15 = vpop.f32.mrf.mxu1  ;;  %1442 = vst [vmem:[%s2521_s30 + $0x18] sm:$0xff] %v1426_v1  ;;  %v1425_v61 = vmax.f32 %v1355_v13, 0.0  ;;  %v1370_v47 = vadd.f32 %v1988_v11, %v1225_v41 }
 0x1f0   : > { %1450 = vst [vmem:[%s2521_s30 + $0x58] sm:$0xff] %v1434_v49  ;;  %v1433_v7 = vmax.f32 %v1395_v43, 0.0  ;;  %v1410_v10 = vadd.f32 %v2000_v15, %v1265_v45  ;;  %v1364_v33 = vpop.f32.mrf.mxu0 }
 0x1f1   : > { %v1404_v20 = vpop.f32.mrf.mxu1  ;;  %1441 = vst [vmem:[%s2521_s30 + $0x10] sm:$0xff] %v1425_v61  ;;  %v1428_v19 = vmax.f32 %v1370_v47, 0.0  ;;  %v1365_v41 = vadd.f32 %v1364_v33, %v3037_v53 }
 0x1f2   : > { %1449 = vst [vmem:[%s2521_s30 + $0x50] sm:$0xff] %v1433_v7  ;;  %v1436_v26 = vmax.f32 %v1410_v10, 0.0  ;;  %v1405_v21 = vadd.f32 %v1404_v20, %v1260_v34  ;;  %v1991_v35 = vpop.f32.mrf.mxu0 }
 0x1f3   : > { %v2003_v37 = vpop.f32.mrf.mxu1  ;;  %1444 = vst [vmem:[%s2521_s30 + $0x28] sm:$0xff] %v1428_v19  ;;  %v1427_v48 = vmax.f32 %v1365_v41, 0.0  ;;  %v1380_v9 = vadd.f32 %v1991_v35, %v1235_v57 }
 0x1f4   : > { %1452 = vst [vmem:[%s2521_s30 + $0x68] sm:$0xff] %v1436_v26  ;;  %v1435_v52 = vmax.f32 %v1405_v21, 0.0  ;;  %v1420_v5 = vadd.f32 %v2003_v37, %v1275_v50  ;;  %v1374_v53 = vpop.f32.mrf.mxu0 }
 0x1f5   : > { %v1414_v30 = vpop.f32.mrf.mxu1  ;;  %1443 = vst [vmem:[%s2521_s30 + $0x20] sm:$0xff] %v1427_v48  ;;  %v1430_v63 = vmax.f32 %v1380_v9, 0.0  ;;  %v1375_v27 = vadd.f32 %v1374_v53, %v1230_v44 }
 0x1f6   : > { %1451 = vst [vmem:[%s2521_s30 + $0x60] sm:$0xff] %v1435_v52  ;;  %v1438_v0 = vmax.f32 %v1420_v5, 0.0  ;;  %v1415_v16 = vadd.f32 %v1414_v30, %v1270_v38 }
 0x1f7   : > { %1446 = vst [vmem:[%s2521_s30 + $0x38] sm:$0xff] %v1430_v63  ;;  %v1429_v40 = vmax.f32 %v1375_v27, 0.0 }
 0x1f8   : > { %1454 = vst [vmem:[%s2521_s30 + $0x78] sm:$0xff] %v1438_v0  ;;  %v1437_v55 = vmax.f32 %v1415_v16, 0.0 }
 0x1f9   : > { %1445 = vst [vmem:[%s2521_s30 + $0x30] sm:$0xff] %v1429_v40 }
 0x1fa   : > { %1453 = vst [vmem:[%s2521_s30 + $0x70] sm:$0xff] %v1437_v55 }
 0x1fb   : > { %2221 = shalt.err (!%p2218_p7)
}
 0x1fc   : > { %s2222_s3 = scalar_lea.hbm %s3082_s4, 2048  ;;  %s2226_s15 = scalar_lea.hbm %s3223_s11, 8192 }
 0x1fd   : > { %p2223_p9 = scmp.ne.s32.totalorder %s3082_s4, %s2222_s3  ;;  %p2227_p2 = scmp.lt.s32.totalorder %s3082_s4, %s3223_s11 }
 0x1fe   : > { %p2228_p4 = scmp.lt.s32.totalorder %s2226_s15, %s2222_s3 }
 0x1ff   : > { %p2224_p10 = pnand %p2223_p9, %p3224_p3 }
 0x200   : > { %p2229_p11 = por %p2228_p4, %p2227_p2 }
 0x201   : > { %p2225_p12 = pneg %p2224_p10 }
 0x203   : > { %p2230_p1 = pnand %p2229_p11, %p2225_p12 }
 0x205   : > { %2233 = shalt.err (!%p2230_p1)
}
 0x206   : > { %s2340_s23 = smov 128   ;;  %s2341_s18 = smov 8  }
 0x207   : > { %2042 = dma.vmem_to_hbm [thread:$0]  (%p3224_p3), %s3084_s26, 2048, %s3082_s4, %s3092_s5, %s2340_s23, %s2340_s23, %s2341_s18  }
 0x208 PF: > { %s3225_s19 = sld [smem:[#allocation12_spill]]  ;;  %p2059_p0 = scmp.ge.s32.totalorder %s2332_s22, 2 }
 0x209   : > { %s3226_s20 = sld [smem:[#allocation14_spill]] }
 0x20e   : > { %s1487_s7 = sand.u32 1, %s3225_s19  }
 0x20f   : > { %p3227_p13 = scmp.ne.s32.totalorder %s3226_s20, 0  ;;  %s1488_s12 = scalar_lea.sflag [#allocation5], %s1487_s7 }
 0x211   : > { %p2053_p5 = pnand %p2059_p0, %p3227_p13 }
 0x213   : > { %p2054_p6 = pneg %p2053_p5 }
 0x215   : > { %2287 = dma.done.wait (%p2054_p6), %s1488_s12, 2048  }
 0x216   : > { %2289 = vsyncadd (%p2054_p6), %s1488_s12, 4294965248  ;;  %s20_s22 = sadd.s32 1, %s2332_s22   ;;  %s3228_s18 = sld [smem:[#allocation13_spill]] }
 0x217   : > { %p17_p8 = scmp.ge.s32.totalorder %s20_s22, 6   ;;  %s3229_s20 = sld [smem:[#allocation15_spill]] }
 0x218   : > { %s3230_s28 = sld [smem:[#allocation16_spill]]  ;;  %s3231_s12 = smov %s2296_s13 }
 0x219   : > { %s3232_s13 = smov %s2300_s14  ;;  %s3233_s14 = smov %s2485_s1 }
 0x21a   : > { %s3234_s15 = smov %s2308_s16  ;;  %s3235_s16 = smov %s2312_s17 }
 0x21b   : > { %s3236_s17 = smov %s2480_s8  ;;  %s3237_s19 = smov %s2328_s21 }
 0x21c   :  { %19 = sbr.rel (!%p17_p8) target bundleno = 13 (0xd), region = 87 }
 0x21e   : > { %s3238_s21 = smov %s3230_s28 }
 0x221   :  { %1493 = vsyncpa [#allocation4], 1 }
 0x222   :  { %1495 = vsyncpa [#allocation4 + $0x1], 1 }
 0x223   :  { %1496 = vsyncpa [#allocation7], 1 }
 0x224   :  { %1497 = vsyncpa [#allocation5], 1 }
 0x225   :  { %1499 = vsyncpa [#allocation5 + $0x1], 1 }

</bundles_post_ra>
